<compile_context>
chip_gen: v5e
topology: v5e:2x2
jax: 0.10.0
libtpu: 0.0.40
codegen_flags: <defaults>
</compile_context>

<pallas_src>
from functools import partial

import jax
import jax.numpy as jnp
from jax.experimental import pallas as pl
from jax.experimental.pallas import tpu as pltpu


# ----------------------------------------------------------------------------
# Fused Pallas kernel: conv1x1+BN+ReLU (a), conv1x1+BN+ReLU (b),
# bilinear 2x upsample of b via a single interpolation matmul, channel concat.
# ----------------------------------------------------------------------------
def _block_a_fused_kernel(*refs, c1, c2, upsample):
    if upsample:
        a_ref, b_ref, wa_ref, ba_ref, wb_ref, bb_ref, kt_ref, o_ref = refs
    else:
        a_ref, b_ref, wa_ref, ba_ref, wb_ref, bb_ref, o_ref = refs
    f32 = jnp.float32

    # ---- a path: (c1, cin_a) @ (cin_a, tile_ma); lane axis = H*W tile ----
    ya = jnp.dot(wa_ref[...], a_ref[...], preferred_element_type=f32)
    ya = jnp.maximum(ya + ba_ref[...], 0.0)
    o_ref[0:c1, :] = ya.astype(o_ref.dtype)

    # ---- b path: 1x1 conv + BN + ReLU, stays in VMEM (f32) ----
    yb = jnp.dot(wb_ref[...], b_ref[...], preferred_element_type=f32)
    yb = jnp.maximum(yb + bb_ref[...], 0.0)                  # (c2, mb)

    if upsample:
        # bilinear align_corners=True 2x upsample == one lane-dense matmul
        up = jnp.dot(yb, kt_ref[...], preferred_element_type=f32)  # (c2, tile_ma)
    else:
        up = yb
    o_ref[c1:c1 + c2, :] = up.astype(o_ref.dtype)


def _interp_matrix(n_in, n_out):
    """Exact bilinear (align_corners=True) 1-D interpolation matrix."""
    if n_in == 1:
        return jnp.ones((n_out, 1), jnp.float32)
    src = jnp.arange(n_out, dtype=jnp.float32) * (n_in - 1) / (n_out - 1)
    i0 = jnp.clip(jnp.floor(src).astype(jnp.int32), 0, n_in - 1)
    i1 = jnp.minimum(i0 + 1, n_in - 1)
    frac = src - i0.astype(jnp.float32)
    m = jnp.zeros((n_out, n_in), jnp.float32)
    m = m.at[jnp.arange(n_out), i0].add(1.0 - frac)
    m = m.at[jnp.arange(n_out), i1].add(frac)
    return m


def _pick_spatial_tile(ma, target=2048):
    """Largest multiple-of-128 divisor of ma that is <= target (else full ma)."""
    if ma % 128 != 0:
        return ma
    t = min(target, ma)
    t -= t % 128
    while t >= 128:
        if ma % t == 0:
            return t
        t -= 128
    return ma


def block_type_a_fused(a, b, w_a, bias_a, w_b, bias_b, *, upscale=True,
                       spatial_tile=None):
    """Fused BlockTypeA forward.

    a      : (N, cin_a, Ha, Wa)   -> conv2 (w_a: (c1, cin_a), bias_a: (c1,))
    b      : (N, cin_b, Hb, Wb)   -> conv1 (w_b: (c2, cin_b), bias_b: (c2,))
    returns: (N, c1+c2, Ho, Wo) with Ho,Wo = 2*Hb,2*Wb if upscale else Hb,Wb
    """
    n, cin_a, h_a, w_sp_a = a.shape
    nb, cin_b, h_b, w_sp_b = b.shape
    assert n == nb
    c1 = w_a.shape[0]
    c2 = w_b.shape[0]
    ctot = c1 + c2
    dt = a.dtype
    itemsize = jnp.dtype(dt).itemsize

    if upscale:
        h_out, w_out = 2 * h_b, 2 * w_sp_b
    else:
        h_out, w_out = h_b, w_sp_b
    assert (h_a, w_sp_a) == (h_out, w_out), "spatial dims must match for concat"

    ma = h_out * w_out
    mb = h_b * w_sp_b

    # Keep both channel-slab stores unmasked (no packed read-modify-write).
    sub = 8 if jnp.dtype(dt) == jnp.dtype(jnp.float32) else 16
    assert c1 % sub == 0, f"c1={c1} must be a multiple of {sub} for dtype {dt}"

    tile_ma = spatial_tile if spatial_tile is not None else _pick_spatial_tile(ma)
    assert ma % tile_ma == 0, (ma, tile_ma)
    n_tiles = ma // tile_ma

    # Free contiguous reshapes (no HBM round trip).
    a2 = a.reshape(n, cin_a, ma)
    b2 = b.reshape(n, cin_b, mb)

    wa_m = w_a.astype(dt)
    wb_m = w_b.astype(dt)
    ba2 = bias_a.reshape(c1, 1).astype(jnp.float32)
    bb2 = bias_b.reshape(c2, 1).astype(jnp.float32)

    in_arrays = [a2, b2, wa_m, ba2, wb_m, bb2]
    in_specs = [
        pl.BlockSpec((None, cin_a, tile_ma), lambda i, j: (i, 0, j)),
        None,  # filled below (depends on upscale)
        pl.BlockSpec((c1, cin_a), lambda i, j: (0, 0)),
        pl.BlockSpec((c1, 1), lambda i, j: (0, 0)),
        pl.BlockSpec((c2, cin_b), lambda i, j: (0, 0)),
        pl.BlockSpec((c2, 1), lambda i, j: (0, 0)),
    ]

    if upscale:
        # Precomputed Kronecker interpolation matrix (f32), sliced per tile.
        wh = _interp_matrix(h_b, h_out)            # (Ho, Hb)
        ww = _interp_matrix(w_sp_b, w_out)         # (Wo, Wb)
        kt = jnp.kron(wh, ww).T.astype(jnp.float32)   # (Hb*Wb, Ho*Wo)
        in_specs[1] = pl.BlockSpec((None, cin_b, mb), lambda i, j: (i, 0, 0))
        in_arrays.append(kt)
        in_specs.append(pl.BlockSpec((mb, tile_ma), lambda i, j: (0, j)))
    else:
        in_specs[1] = pl.BlockSpec((None, cin_b, tile_ma), lambda i, j: (i, 0, j))

    # ---- cost estimate (memory-bound kernel; help XLA schedule around it) ----
    up_flops = 2 * c2 * mb * ma if upscale else 0
    flops = n * (2 * c1 * cin_a * ma + 2 * c2 * cin_b * mb + up_flops)
    bytes_accessed = ((a2.size + b2.size + n * ctot * ma) * itemsize
                      + (wa_m.size + wb_m.size) * itemsize
                      + (ba2.size + bb2.size) * 4
                      + (mb * ma * 4 if upscale else 0))
    cost = pl.CostEstimate(flops=int(flops), transcendentals=0,
                           bytes_accessed=int(bytes_accessed))

    # ---- explicit VMEM budget (v5e 16 MiB / v7x 32 MiB scoped defaults) ----
    blk_bytes = (cin_a * tile_ma * itemsize
                 + cin_b * (mb if upscale else tile_ma) * itemsize
                 + ctot * tile_ma * itemsize
                 + (mb * tile_ma * 4 if upscale else 0)
                 + (c1 * cin_a + c2 * cin_b) * itemsize
                 + (c1 + c2) * 4)
    live_f32 = 4 * (c1 * tile_ma + c2 * mb + (c2 * tile_ma if upscale else 0))
    needed = 2 * blk_bytes + live_f32          # double-buffered blocks + live vregs
    vmem_limit = int(min(max(2 * needed, 32 * 1024 * 1024), 64 * 1024 * 1024))

    kernel = partial(_block_a_fused_kernel, c1=c1, c2=c2, upsample=upscale)

    out = pl.pallas_call(
        kernel,
        out_shape=jax.ShapeDtypeStruct((n, ctot, ma), dt),
        grid_spec=pl.GridSpec(
            grid=(n, n_tiles),
            in_specs=in_specs,
            out_specs=pl.BlockSpec((None, ctot, tile_ma), lambda i, j: (i, 0, j)),
        ),
        compiler_params=pltpu.CompilerParams(
            dimension_semantics=("parallel", "parallel"),
            vmem_limit_bytes=vmem_limit),
        cost_estimate=cost,
    )(*in_arrays)

    return out.reshape(n, ctot, h_out, w_out)


# ----------------------------------------------------------------------------
# BN folding + parameter construction + module-level wrapper
# ----------------------------------------------------------------------------
def fold_conv_bn(conv_w, conv_b, gamma, beta, mean, var, eps=1e-5):
    """Fold 1x1 conv (Cout, Cin, 1, 1) + BN into (Cout, Cin) weight and bias."""
    scale = gamma / jnp.sqrt(var + eps)                 # (Cout,)
    w_fused = conv_w[:, :, 0, 0] * scale[:, None]       # (Cout, Cin)
    b_fused = beta + (conv_b - mean) * scale            # (Cout,)
    return w_fused.astype(jnp.float32), b_fused.astype(jnp.float32)


def make_params(key, in_c1, in_c2, out_c1, out_c2):
    ks = jax.random.split(key, 12)

    def bn(kg, kb, km, kv, c):
        return (jax.random.uniform(kg, (c,), jnp.float32, 0.5, 1.5),   # gamma
                jax.random.normal(kb, (c,), jnp.float32) * 0.1,        # beta
                jax.random.normal(km, (c,), jnp.float32) * 0.1,        # mean
                jax.random.uniform(kv, (c,), jnp.float32, 0.5, 1.5))   # var

    p = {}
    p["conv1_w"] = jax.random.normal(ks[0], (out_c2, in_c2, 1, 1), jnp.float32) * 0.2
    p["conv1_b"] = jax.random.normal(ks[1], (out_c2,), jnp.float32) * 0.05
    p["bn1"] = bn(ks[2], ks[3], ks[4], ks[5], out_c2)
    p["conv2_w"] = jax.random.normal(ks[6], (out_c1, in_c1, 1, 1), jnp.float32) * 0.2
    p["conv2_b"] = jax.random.normal(ks[7], (out_c1,), jnp.float32) * 0.05
    p["bn2"] = bn(ks[8], ks[9], ks[10], ks[11], out_c1)
    return p


def block_type_a(a, b, params, upscale=True, spatial_tile=None):
    """BlockTypeA.forward: conv1 acts on b, conv2 acts on a, then upsample+cat."""
    w1, b1 = fold_conv_bn(params["conv1_w"], params["conv1_b"], *params["bn1"])
    w2, b2 = fold_conv_bn(params["conv2_w"], params["conv2_b"], *params["bn2"])
    return block_type_a_fused(a, b, w2, b2, w1, b1, upscale=upscale,
                              spatial_tile=spatial_tile)


# ----------------------------------------------------------------------------
# Pure-JAX reference for verification (uses the same quantized inputs/weights)
# ----------------------------------------------------------------------------
def block_type_a_ref(a, b, params, upscale=True):
    w1, b1 = fold_conv_bn(params["conv1_w"], params["conv1_b"], *params["bn1"])
    w2, b2 = fold_conv_bn(params["conv2_w"], params["conv2_b"], *params["bn2"])
    dt = a.dtype
    # Quantize fused weights exactly as the kernel does, then compute in f32.
    w1q = w1.astype(dt).astype(jnp.float32)
    w2q = w2.astype(dt).astype(jnp.float32)
    af = a.astype(jnp.float32)
    bf = b.astype(jnp.float32)

    def cbr(x, w, bias):
        y = jnp.einsum("nchw,oc->nohw", x, w,
                       precision=jax.lax.Precision.HIGHEST)
        return jnp.maximum(y + bias[None, :, None, None], 0.0)

    b_out = cbr(bf, w1q, b1)
    a_out = cbr(af, w2q, b2)
    if upscale:
        _, _, H, W = b_out.shape
        wh = _interp_matrix(H, 2 * H)
        ww = _interp_matrix(W, 2 * W)
        b_out = jnp.einsum("oh,nchw,pw->ncop", wh, b_out, ww,
                           precision=jax.lax.Precision.HIGHEST)
    return jnp.concatenate((a_out, b_out), axis=1)


if __name__ == "__main__":
    # block12-like channel config at reduced spatial size:
    # a: stride-8-like map, b: stride-16-like map.
    in_c1, in_c2, out_c1, out_c2 = 32, 64, 64, 64
    N, Hb, Wb = 2, 16, 16            # b spatial; a spatial is 2x (concat req.)

    key = jax.random.PRNGKey(0)
    ka, kb, kp = jax.random.split(key, 3)
    a_f32 = jax.random.normal(ka, (N, in_c1, 2 * Hb, 2 * Wb), jnp.float32)
    b_f32 = jax.random.normal(kb, (N, in_c2, Hb, Wb), jnp.float32)
    params = make_params(kp, in_c1, in_c2, out_c1, out_c2)

    # bf16 I/O end-to-end (kernel is HBM-bandwidth-bound); f32 accumulation
    # and epilogue stay inside the kernel.
    a = a_f32.astype(jnp.bfloat16)
    b = b_f32.astype(jnp.bfloat16)

    # spatial_tile=512 exercises the 2-axis parallel grid (batch x spatial).
    out = jax.block_until_ready(
        block_type_a(a, b, params, upscale=True, spatial_tile=512))
    ref = jax.block_until_ready(block_type_a_ref(a, b, params, upscale=True))

    assert out.shape == (N, out_c1 + out_c2, 2 * Hb, 2 * Wb), out.shape
    out_f32 = out.astype(jnp.float32)
    max_err = float(jnp.max(jnp.abs(out_f32 - ref)))
    # Output is bf16 (~0.4% relative rounding); compare with loosened tolerance.
    assert jnp.allclose(out_f32, ref, atol=3e-2, rtol=2e-2), max_err
    print("KERNEL_OK")
</pallas_src>

<mosaic_0001>
module attributes {stable_mosaic.version = 11 : i64} {
  func.func @_block_a_fused_kernel(%arg0: i32, %arg1: i32, %arg2: memref<1x32x512xbf16, #tpu.memory_space<vmem>>, %arg3: memref<1x64x256xbf16, #tpu.memory_space<vmem>>, %arg4: memref<64x32xbf16, #tpu.memory_space<vmem>>, %arg5: memref<64x1xf32, #tpu.memory_space<vmem>>, %arg6: memref<64x64xbf16, #tpu.memory_space<vmem>>, %arg7: memref<64x1xf32, #tpu.memory_space<vmem>>, %arg8: memref<256x512xf32, #tpu.memory_space<vmem>>, %arg9: memref<1x128x512xbf16, #tpu.memory_space<vmem>>) attributes {dimension_semantics = [#tpu.dimension_semantics<parallel>, #tpu.dimension_semantics<parallel>], iteration_bounds = array<i64: 2, 2>, scalar_prefetch = 0 : i64, scratch_operands = 0 : i64, tpu.core_type = #tpu.core_type<tc>, window_params = [{transform_indices = @transform_0, window_bounds = array<i64: 1, 32, 512>}, {transform_indices = @transform_1, window_bounds = array<i64: 1, 64, 256>}, {pipeline_mode = #tpu.pipeline_mode<synchronous>, transform_indices = @transform_2, window_bounds = array<i64: 64, 32>}, {pipeline_mode = #tpu.pipeline_mode<synchronous>, transform_indices = @transform_3, window_bounds = array<i64: 64, 1>}, {pipeline_mode = #tpu.pipeline_mode<synchronous>, transform_indices = @transform_4, window_bounds = array<i64: 64, 64>}, {pipeline_mode = #tpu.pipeline_mode<synchronous>, transform_indices = @transform_5, window_bounds = array<i64: 64, 1>}, {transform_indices = @transform_6, window_bounds = array<i64: 256, 512>}, {transform_indices = @transform_7, window_bounds = array<i64: 1, 128, 512>}]} {
    %c0 = arith.constant 0 : index
    %c0_0 = arith.constant 0 : index
    %0 = vector.load %arg4[%c0, %c0_0] : memref<64x32xbf16, #tpu.memory_space<vmem>>, vector<64x32xbf16>
    %c0_1 = arith.constant 0 : index
    %c0_2 = arith.constant 0 : index
    %c0_3 = arith.constant 0 : index
    %1 = vector.load %arg2[%c0_1, %c0_2, %c0_3] : memref<1x32x512xbf16, #tpu.memory_space<vmem>>, vector<1x32x512xbf16>
    %2 = vector.shape_cast %1 : vector<1x32x512xbf16> to vector<32x512xbf16>
    %cst = arith.constant dense<0.000000e+00> : vector<64x512xf32>
    %3 = tpu.matmul %0, %2, %cst {dimension_numbers = #tpu.dot_dimension_numbers<[1], [0], [0], [1], [0, 0, 1, 1], [], []>} : vector<64x32xbf16>, vector<32x512xbf16>, vector<64x512xf32> -> vector<64x512xf32>
    %c0_4 = arith.constant 0 : index
    %c0_5 = arith.constant 0 : index
    %4 = vector.load %arg5[%c0_4, %c0_5] : memref<64x1xf32, #tpu.memory_space<vmem>>, vector<64x1xf32>
    %5 = vector.broadcast %4 : vector<64x1xf32> to vector<64x512xf32>
    %6 = arith.addf %3, %5 : vector<64x512xf32>
    %cst_6 = arith.constant 0.000000e+00 : f32
    %7 = vector.broadcast %cst_6 : f32 to vector<64x512xf32>
    %8 = arith.maximumf %6, %7 : vector<64x512xf32>
    %9 = arith.truncf %8 : vector<64x512xf32> to vector<64x512xbf16>
    %c0_7 = arith.constant 0 : index
    %c0_8 = arith.constant 0 : index
    %c0_9 = arith.constant 0 : index
    %10 = vector.load %arg9[%c0_7, %c0_8, %c0_9] : memref<1x128x512xbf16, #tpu.memory_space<vmem>>, vector<1x64x512xbf16>
    %11 = vector.shape_cast %10 : vector<1x64x512xbf16> to vector<64x512xbf16>
    %12 = vector.shape_cast %9 : vector<64x512xbf16> to vector<1x64x512xbf16>
    tpu.vector_store %arg9[%c0_7, %c0_8, %c0_9], %12 {strides = array<i32>} : memref<1x128x512xbf16, #tpu.memory_space<vmem>>, vector<1x64x512xbf16>,
    %c0_10 = arith.constant 0 : index
    %c0_11 = arith.constant 0 : index
    %13 = vector.load %arg6[%c0_10, %c0_11] : memref<64x64xbf16, #tpu.memory_space<vmem>>, vector<64x64xbf16>
    %c0_12 = arith.constant 0 : index
    %c0_13 = arith.constant 0 : index
    %c0_14 = arith.constant 0 : index
    %14 = vector.load %arg3[%c0_12, %c0_13, %c0_14] : memref<1x64x256xbf16, #tpu.memory_space<vmem>>, vector<1x64x256xbf16>
    %15 = vector.shape_cast %14 : vector<1x64x256xbf16> to vector<64x256xbf16>
    %cst_15 = arith.constant dense<0.000000e+00> : vector<64x256xf32>
    %16 = tpu.matmul %13, %15, %cst_15 {dimension_numbers = #tpu.dot_dimension_numbers<[1], [0], [0], [1], [0, 0, 1, 1], [], []>} : vector<64x64xbf16>, vector<64x256xbf16>, vector<64x256xf32> -> vector<64x256xf32>
    %c0_16 = arith.constant 0 : index
    %c0_17 = arith.constant 0 : index
    %17 = vector.load %arg7[%c0_16, %c0_17] : memref<64x1xf32, #tpu.memory_space<vmem>>, vector<64x1xf32>
    %18 = vector.broadcast %17 : vector<64x1xf32> to vector<64x256xf32>
    %19 = arith.addf %16, %18 : vector<64x256xf32>
    %cst_18 = arith.constant 0.000000e+00 : f32
    %20 = vector.broadcast %cst_18 : f32 to vector<64x256xf32>
    %21 = arith.maximumf %19, %20 : vector<64x256xf32>
    %c0_19 = arith.constant 0 : index
    %c0_20 = arith.constant 0 : index
    %22 = vector.load %arg8[%c0_19, %c0_20] : memref<256x512xf32, #tpu.memory_space<vmem>>, vector<256x512xf32>
    %cst_21 = arith.constant dense<0.000000e+00> : vector<64x512xf32>
    %23 = tpu.matmul %21, %22, %cst_21 {dimension_numbers = #tpu.dot_dimension_numbers<[1], [0], [0], [1], [0, 0, 1, 1], [], []>} : vector<64x256xf32>, vector<256x512xf32>, vector<64x512xf32> -> vector<64x512xf32>
    %24 = arith.truncf %23 : vector<64x512xf32> to vector<64x512xbf16>
    %c0_22 = arith.constant 0 : index
    %c64 = arith.constant 64 : index
    %c0_23 = arith.constant 0 : index
    %25 = vector.load %arg9[%c0_22, %c64, %c0_23] : memref<1x128x512xbf16, #tpu.memory_space<vmem>>, vector<1x64x512xbf16>
    %26 = vector.shape_cast %25 : vector<1x64x512xbf16> to vector<64x512xbf16>
    %27 = vector.shape_cast %24 : vector<64x512xbf16> to vector<1x64x512xbf16>
    tpu.vector_store %arg9[%c0_22, %c64, %c0_23], %27 {strides = array<i32>} : memref<1x128x512xbf16, #tpu.memory_space<vmem>>, vector<1x64x512xbf16>,
    return
  }
  func.func @transform_0(%arg0: i32, %arg1: i32) -> (i32, i32, i32) {
    %c0_i32 = arith.constant 0 : i32
    %c0_i32_0 = arith.constant 0 : i32
    return %arg0, %c0_i32, %arg1 : i32, i32, i32
  }
  func.func @transform_1(%arg0: i32, %arg1: i32) -> (i32, i32, i32) {
    %c0_i32 = arith.constant 0 : i32
    %c0_i32_0 = arith.constant 0 : i32
    %c0_i32_1 = arith.constant 0 : i32
    return %arg0, %c0_i32, %c0_i32_0 : i32, i32, i32
  }
  func.func @transform_2(%arg0: i32, %arg1: i32) -> (i32, i32) {
    %c0_i32 = arith.constant 0 : i32
    %c0_i32_0 = arith.constant 0 : i32
    %c0_i32_1 = arith.constant 0 : i32
    return %c0_i32, %c0_i32_0 : i32, i32
  }
  func.func @transform_3(%arg0: i32, %arg1: i32) -> (i32, i32) {
    %c0_i32 = arith.constant 0 : i32
    %c0_i32_0 = arith.constant 0 : i32
    %c0_i32_1 = arith.constant 0 : i32
    return %c0_i32, %c0_i32_0 : i32, i32
  }
  func.func @transform_4(%arg0: i32, %arg1: i32) -> (i32, i32) {
    %c0_i32 = arith.constant 0 : i32
    %c0_i32_0 = arith.constant 0 : i32
    %c0_i32_1 = arith.constant 0 : i32
    return %c0_i32, %c0_i32_0 : i32, i32
  }
  func.func @transform_5(%arg0: i32, %arg1: i32) -> (i32, i32) {
    %c0_i32 = arith.constant 0 : i32
    %c0_i32_0 = arith.constant 0 : i32
    %c0_i32_1 = arith.constant 0 : i32
    return %c0_i32, %c0_i32_0 : i32, i32
  }
  func.func @transform_6(%arg0: i32, %arg1: i32) -> (i32, i32) {
    %c0_i32 = arith.constant 0 : i32
    %c0_i32_0 = arith.constant 0 : i32
    return %c0_i32, %arg1 : i32, i32
  }
  func.func @transform_7(%arg0: i32, %arg1: i32) -> (i32, i32, i32) {
    %c0_i32 = arith.constant 0 : i32
    %c0_i32_0 = arith.constant 0 : i32
    return %arg0, %c0_i32, %arg1 : i32, i32, i32
  }
}

</mosaic_0001>

<bundles_post_ra>
// kernel: tpu_custom_call.1
= control target key start
LH: loop header
LB: loop body
LE: loop exit
PB: predicated region body
PF: predicated region fallthrough
CT: control target
= control target key end

     0   :  { %s2768_s0 = inlined_call_operand.hbm [shape: bf16[2,32,1024], index: 0, kind: input, shape index: {}]   ;;  %s2769_s1 = inlined_call_operand.vmem [shape: bf16[2,64,256], index: 1, kind: input, shape index: {}]   ;;  %s2770_s2 = inlined_call_operand.vmem [shape: bf16[64,32], index: 2, kind: input, shape index: {}]   ;;  %s2771_s3 = inlined_call_operand.vmem [shape: f32[64,1], index: 3, kind: input, shape index: {}]   ;;  %s2772_s4 = inlined_call_operand.vmem [shape: bf16[64,64], index: 4, kind: input, shape index: {}]   ;;  %s2773_s5 = inlined_call_operand.vmem [shape: f32[64,1], index: 5, kind: input, shape index: {}]   ;;  %s2774_s6 = inlined_call_operand.hbm [shape: f32[256,1024], index: 6, kind: input, shape index: {}]   ;;  %s2775_s7 = inlined_call_operand.hbm [shape: bf16[2,128,1024], index: 7, kind: output, shape index: {}]  }
   0x1   :  { %2787 = sst [smem:[#allocation18_spill]] %s2768_s0 }
   0x2   :  { %2788 = sst [smem:[#allocation19_spill]] %s2772_s4 }
   0x3   :  { %2789 = sst [smem:[#allocation20_spill]] %s2775_s7 }
   0x4   :  { %12 = vsyncpa [#allocation3], 0 }
   0x5   :  { %14 = vsyncpa [#allocation3 + $0x1], 0 }
   0x6   :  { %15 = vsyncpa [#allocation6], 0 }
   0x7   :  { %17 = vsyncpa [#allocation6 + $0x1], 0 }
   0x8   :  { %18 = vsyncpa [#allocation4], 0 }
   0x9   :  { %20 = vsyncpa [#allocation4 + $0x1], 0  ;;  %s2071_s24 = smov 0   ;;  %s2073_s25 = smov 0  }
   0xa   :  { %s2075_s26 = smov 0   ;;  %s2077_s27 = smov 0  }
   0xb   :  { %s2079_s28 = smov 0   ;;  %s2081_s29 = smov 0  }
   0xc   :  { %s2083_s30 = smov 0   ;;  %s2085_s8 = smov 0  }
   0xd   :  { %s2087_s9 = smov 0   ;;  %s2089_s10 = smov 0  }
   0xe   :  { %s2091_s11 = smov 0  }
   0xf LB: > { %2790 = sst [smem:[#allocation11_spill]] %s1992_s27  ;;  %s1542_s12 = sadd.s32 4294967295, %s2020_s11   ;;  %s2020_s11 = sphi %s2091_s11, %s26_s11   ;;  %s2016_s10 = sphi %s2089_s10, %s2816_s10   ;;  %s2012_s9 = sphi %s2087_s9, %s2825_s9   ;;  %s2008_s8 = sphi %s2085_s8, %s2824_s8   ;;  %s2004_s30 = sphi %s2083_s30, %s2823_s30   ;;  %s2000_s29 = sphi %s2081_s29, %s2822_s29   ;;  %s1996_s28 = sphi %s2079_s28, %s2821_s28   ;;  %s1992_s27 = sphi %s2077_s27, %s2820_s27   ;;  %s1988_s26 = sphi %s2075_s26, %s2819_s26   ;;  %s1984_s25 = sphi %s2073_s25, %s2818_s25   ;;  %s1980_s24 = sphi %s2071_s24, %s2817_s24  }
  0x10   : > { %2791 = sst [smem:[#allocation12_spill]] %s2004_s30  ;;  %s1543_s13 = sadd.s32 4294967294, %s2020_s11  }
  0x11   : > { %2792 = sst [smem:[#allocation13_spill]] %s2016_s10  ;;  %s35_s14 = sadd.s32 1, %s2012_s9 }
  0x12   : > { %s38_s15 = sadd.s32 1, %s2016_s10  ;;  %p36_p0 = scmp.ge.s32.totalorder %s35_s14, 2 }
  0x13   : > { %s47_s16 = sadd.s32 1, %s2000_s29  ;;  %p54_p1 = scmp.ne.s32.totalorder %s2000_s29, %s1996_s28 }
  0x14   : > { %p55_p2 = scmp.eq.s32.totalorder %s2020_s11, 0  ;;  %s2827_s14 = smov (%p36_p0, %s35_s14), 0 }
  0x15   : > { %2793 = sst [smem:[#allocation14_spill]] %s2827_s14  ;;  %s2829_s15 = smov (!%p36_p0, %s38_s15), %s2016_s10 }
  0x16   : > { %s2139_s17 = ssub.s32 %s2012_s9, %s2827_s14  ;;  %p2146_p3 = por %p55_p2, %p54_p1 }
  0x17   : > { %p40_p4 = scmp.ge.s32.totalorder %s2829_s15, 2  ;;  %p60_p5 = scmp.ne.s32.totalorder %s1996_s28, %s1992_s27 }
  0x18   : > { %p2152_p6 = scmp.eq.s32.totalorder %s1542_s12, 0  ;;  %p181_p7 = scmp.eq.s32.totalorder %s2139_s17, 0 }
  0x19   : > { %s2831_s15 = smov (%p40_p4, %s2829_s15), 0  ;;  %p222_p9 = scmp.eq.s32.totalorder %s1542_s12, 3 }
  0x1a   : > { %2796 = sst [smem:[#allocation15_spill]] %s2831_s15  ;;  %p2161_p8 = por %p2152_p6, %p60_p5 }
  0x1b   : > { %s42_s21 = ssub.s32 %s2016_s10, %s2831_s15  ;;  %p228_p10 = scmp.eq.s32.totalorder %s1543_s13, 3 }
  0x1c   : > { %s44_s22 = sor.u32 %s2139_s17, %s42_s21  ;;  %p2171_p11 = por %p222_p9, %p54_p1 }
  0x1d   : > { %p45_p12 = scmp.eq.s32.totalorder %s44_s22, 0  ;;  %p2175_p13 = por %p228_p10, %p60_p5 }
  0x1e   : > { %s2798_s23 = scalar_select %p2171_p11, 1, 0 }
  0x1f   : > { %s2800_s14 = scalar_select %p2175_p13, 1, 0 }
  0x20   : > { %2799 = sst [smem:[#allocation16_spill]] %s2798_s23  ;;  %p2784_p0 = scmp.lt.s32.totalorder %s2020_s11, 4 }
  0x21   : > { %2801 = sst [smem:[#allocation17_spill]] %s2800_s14  ;;  %s260_s7 = sand.u32 1, %s2000_s29  }
  0x22   : > { %s2181_s27 = scalar_select %p45_p12, %s2000_s29, %s47_s16  }
  0x23   : > { %s1547_s12 = sshll.u32 %s2012_s9, 2  ;;  %s1546_s15 = sshll.u32 %s260_s7, 6 }
  0x24   : > { %s1548_s13 = sshll.u32 %s2016_s10, 5  ;;  %s264_s30 = scalar_lea.vmem [#allocation2], %s1546_s15 }
  0x25   : > { %s269_s21 = sadd.s32 %s1548_s13, %s1547_s12  ;;  %s274_s4 = sshll.u32 %s264_s30, 4  ;;  %s275_s4 = int_to_ptr.vmem [resolvable:$true] %s274_s4 }
  0x26   : > { %s1549_s22 = sshll.u32 %s269_s21, 2  ;;  %s2802_s0 = sld [smem:[#allocation18_spill]] }
  0x27   : > { %p1722_p1 = pnand %p2784_p0, %p2146_p3  ;;  %s261_s30 = scalar_lea.sflag [#allocation3], %s260_s7 }
  0x28   : > { %s2785_s12 = smov 512   ;;  %s2023_s13 = smov 256  }
  0x29   : > { %s2024_s21 = smov 16   ;;  %p1553_p4 = scmp.ge.s32.totalorder %s2020_s11, 1 }
  0x2a   : > { %p312_p5 = scmp.lt.s32.totalorder %s2020_s11, 5  ;;  %s183_s18 = sadd.s32 1, %s1988_s26 }
  0x2b   : > { %s2204_s23 = scalar_select %p181_p7, %s1988_s26, %s183_s18  }
  0x2c   : > { %s271_s16 = scalar_lea.hbm %s2802_s0, %s1549_s22  ;;  %p2196_p9 = pnand %p1553_p4, %p312_p5 }
  0x2d   : > { %s272_s15 = sshll.u32 %s271_s16, 4  ;;  %p190_p3 = scmp.ne.s32.totalorder %s1988_s26, %s1984_s25  ;;  %s273_s15 = int_to_ptr.hbm [resolvable:$true] %s272_s15 }
  0x2e   : > { %1724 = dma.hbm_to_vmem [thread:$0]  (!%p1722_p1), %s273_s15, 1024, %s275_s4, %s261_s30, %s2785_s12, %s2023_s13, %s2024_s21  }
  0x2f   : > { %p196_p10 = scmp.ne.s32.totalorder %s1984_s25, %s1980_s24  ;;  %s292_s22 = sand.u32 1, %s1988_s26  }
  0x30   : > { %s1685_s7 = sshll.u32 %s2012_s9, 5  ;;  %p192_p12 = por %p190_p3, %p55_p2 }
  0x31   : > { %p2216_p0 = por %p196_p10, %p2152_p6  ;;  %s1550_s16 = sshll.u32 %s292_s22, 10 }
  0x32   : > { %s301_s13 = scalar_lea.hbm %s2774_s6, %s1685_s7  ;;  %s296_s17 = scalar_lea.vmem [#allocation5], %s1550_s16 }
  0x33   : > { %s302_s21 = sshll.u32 %s301_s13, 4  ;;  %s304_s18 = sshll.u32 %s296_s17, 4  ;;  %s303_s21 = int_to_ptr.hbm [resolvable:$true] %s302_s21  ;;  %s305_s18 = int_to_ptr.vmem [resolvable:$true] %s304_s18 }
  0x34   : > { %p2805_p7 = scmp.lt.s32.totalorder %s2020_s11, 4  ;;  %s293_s24 = scalar_lea.sflag [#allocation6], %s292_s22 }
  0x35   : > { %s2025_s12 = smov 1024   ;;  %s2026_s0 = smov 32  }
  0x36   : > { %p1725_p1 = pnand %p2805_p7, %p192_p12  ;;  %s2806_s19 = smov 512  }
  0x37   : > { %316 = sbr.rel (%p2196_p9) target bundleno = 501 (0x1f5), region = 48  ;;  %s2229_s10 = sand.u32 (!%p2196_p9), 1, %s1996_s28  }
  0x38   : > { %1727 = dma.hbm_to_vmem [thread:$0]  (!%p1725_p1), %s303_s21, 16384, %s305_s18, %s293_s24, %s2025_s12, %s2806_s19, %s2026_s0  }
  0x39   : > { %s1554_s7 = sshll.u32 (!%p2196_p9), %s2229_s10, 6  ;;  %s319_s16 = scalar_lea.sflag (!%p2196_p9), [#allocation3], %s2229_s10 }
  0x3a   : > { %s2233_s15 = scalar_lea.vmem (!%p2196_p9), [#allocation2], %s1554_s7 }
  0x3c   : > { %1967 = dma.done.wait (%p2161_p8), %s319_s16, 1024  }
  0x3d   : > { %1969 = vsyncadd (%p2161_p8), %s319_s16, 4294966272  ;;  %s328_s0 = sand.u32 1, %s1984_s25  }
  0x3e   : > { %s1555_s12 = sshll.u32 %s328_s0, 10  ;;  %s329_s14 = scalar_lea.sflag [#allocation6], %s328_s0 }
  0x3f   : > { %s2240_s22 = scalar_lea.vmem [#allocation5], %s1555_s12 }
  0x40   : > { %1971 = dma.done.wait (%p2216_p0), %s329_s14, 16384  }
  0x41   : > { %1973 = vsyncadd (%p2216_p0), %s329_s14, 4294950912  ;;  %p375_p2 = scmp.lt.s32.totalorder %s2008_s8, 1  ;;  %v2027_v0 = vmov 0   ;;  %v1593_v1 = vld [vmem:[%s2233_s15 + $0x20] sm:$0xf]  ;;  %v2276_v19 = vld [vmem:[%s2770_s2 + $0x10] sm:$0xff] }
  0x42   : > { %1831 = vset.pattern.permute.xlu0 %v2027_v0  ;;  %1832 = vset.pattern.permute.xlu1 %v2027_v0  ;;  %v1697_v2 = vld [vmem:[%s2233_s15 + $0x2c] sm:$0xf0]  ;;  %v1695_v3 = vld [vmem:[%s2233_s15 + $0x24] sm:$0xf]  ;;  %v1595_v5 = vld [vmem:[%s2233_s15 + $0x30] sm:$0xf0] }
  0x43   : > { %s376_s20 = scalar_select %p375_p2, %s2008_s8, 1  ;;  %1833 = vset.pattern.permute.xlu2 %v2027_v0  ;;  %v1594_v4 = vor.u32 %v1697_v2, %v1593_v1  ;;  %v716_v6 = vld [vmem:[%s2773_s5] sm:$0xff]  ;;  %v1598_v8 = vor.u32 %v1695_v3, %v1595_v5  ;;  %v1693_v9 = vld [vmem:[%s2233_s15 + $0xc] sm:$0xf0]  ;;  %v1579_v11 = vld [vmem:[%s2233_s15 + $0x10] sm:$0xf0] }
  0x44   : > { %v1577_v7 = vld [vmem:[%s2233_s15] sm:$0xf]  ;;  %726 = vperm.xlu0 %1831, %v716_v6   ;;  %v1691_v10 = vld [vmem:[%s2233_s15 + $0x4] sm:$0xf]  ;;  %v718_v22 = vld [vmem:[%s2773_s5 + $0x10] sm:$0xff]  ;;  %vm507_vm0 = vcmask 261120  }
  0x45   : > { %s1686_s30 = sshll.u32 %s376_s20, 6  ;;  %526 = vmatpush.bf16.msra.mxu0 %v1594_v4  ;;  %1711 = vmatpush.bf16.msra.mxu2 %v1594_v4  ;;  %v1578_v12 = vor.u32 %v1693_v9, %v1577_v7  ;;  %v1582_v14 = vor.u32 %v1691_v10, %v1579_v11  ;;  %v2268_v15 = vld [vmem:[%s2770_s2] sm:$0xff]  ;;  %v717_v27 = vld [vmem:[%s2773_s5 + $0x8] sm:$0xff]  ;;  %v719_v35 = vld [vmem:[%s2773_s5 + $0x18] sm:$0xff]  ;;  %s2807_s14 = sld [smem:[#allocation19_spill]]  ;;  %vm824_vm1 = vcmask 523264  }
  0x46   : > { %s2254_s21 = scalar_lea.vmem %s2769_s1, %s1686_s30  ;;  %555 = vmatpush.bf16.msra.mxu1 %v1598_v8  ;;  %1713 = vmatpush.bf16.msra.mxu3 %v1598_v8  ;;  %v720_v31 = vld [vmem:[%s2773_s5 + $0x20] sm:$0xff]  ;;  %v1601_v37 = vld [vmem:[%s2233_s15 + $0x28] sm:$0xf]  ;;  %v1698_v38 = vld [vmem:[%s2233_s15 + $0x34] sm:$0xf0]  ;;  %s1556_s16 = sshll.u32 %s2229_s10, 8 }
  0x47   : > { %v1665_v13 = vld [vmem:[%s2254_s21 + $0x30] sm:$0xf]  ;;  %v1710_v16 = vld [vmem:[%s2254_s21 + $0x34] sm:$0xf0]  ;;  %v1709_v17 = vld [vmem:[%s2254_s21 + $0x34] sm:$0xf]  ;;  %736 = vperm.xlu1 %1832, %v718_v22   ;;  %746 = vperm.xlu2 %1833, %v720_v31   ;;  %v1602_v44 = vor.u32 %v1698_v38, %v1601_v37 }
  0x48   : > { %v1667_v18 = vld [vmem:[%s2254_s21 + $0x38] sm:$0xf0]  ;;  %v1666_v20 = vor.u32 %v1710_v16, %v1665_v13  ;;  %v1657_v23 = vld [vmem:[%s2254_s21 + $0x20] sm:$0xf]  ;;  %v1708_v24 = vld [vmem:[%s2254_s21 + $0x24] sm:$0xf0] }
  0x49   : > { %v1670_v21 = vor.u32 %v1709_v17, %v1667_v18  ;;  %v1707_v25 = vld [vmem:[%s2254_s21 + $0x24] sm:$0xf]  ;;  %v1659_v26 = vld [vmem:[%s2254_s21 + $0x28] sm:$0xf0]  ;;  %527 = vmatpush.bf16.msra.mxu0 %v1578_v12  ;;  %1712 = vmatpush.bf16.msra.mxu2 %v1578_v12  ;;  %v1658_v28 = vor.u32 %v1708_v24, %v1657_v23  ;;  %v1649_v30 = vld [vmem:[%s2254_s21 + $0x10] sm:$0xf] }
  0x4a   : > { %556 = vmatpush.bf16.msra.mxu1 %v1582_v14  ;;  %1714 = vmatpush.bf16.msra.mxu3 %v1582_v14  ;;  %v1662_v29 = vor.u32 %v1707_v25, %v1659_v26  ;;  %v1706_v32 = vld [vmem:[%s2254_s21 + $0x14] sm:$0xf0]  ;;  %v1705_v33 = vld [vmem:[%s2254_s21 + $0x14] sm:$0xf]  ;;  %v1651_v34 = vld [vmem:[%s2254_s21 + $0x18] sm:$0xf0] }
  0x4b   : > { %v1641_v36 = vld [vmem:[%s2254_s21] sm:$0xf]  ;;  %v1696_v39 = vld [vmem:[%s2233_s15 + $0x2c] sm:$0xf]  ;;  %v1650_v40 = vor.u32 %v1706_v32, %v1649_v30  ;;  %v1654_v41 = vor.u32 %v1705_v33, %v1651_v34  ;;  %v1704_v42 = vld [vmem:[%s2254_s21 + $0x4] sm:$0xf0] }
  0x4c   : > { %1607 = vmatmul.msk.bf16.vlgmr.msra.gmra.mxu0 %vm507_vm0, %v2268_v15  ;;  %1609 = vmatmul.msk.bf16.vlgmr.msra.gmra.mxu2 %vm507_vm0, %v2276_v19  ;;  %v1703_v43 = vld [vmem:[%s2254_s21 + $0x4] sm:$0xf]  ;;  %v1603_v45 = vld [vmem:[%s2233_s15 + $0x38] sm:$0xf0]  ;;  %v1643_v46 = vld [vmem:[%s2254_s21 + $0x8] sm:$0xf0]  ;;  %v1642_v54 = vor.u32 %v1704_v42, %v1641_v36 }
  0x4d   : > { %841 = vmatpush.bf16.msrb.mxu0 %v1666_v20  ;;  %1611 = vmatmul.msk.bf16.vlgmr.msra.gmra.mxu1 %vm507_vm0, %v2268_v15  ;;  %v1606_v47 = vor.u32 %v1696_v39, %v1603_v45  ;;  %v1585_v48 = vld [vmem:[%s2233_s15 + $0x8] sm:$0xf]  ;;  %v1694_v49 = vld [vmem:[%s2233_s15 + $0x14] sm:$0xf0]  ;;  %v1692_v51 = vld [vmem:[%s2233_s15 + $0xc] sm:$0xf]  ;;  %v1646_v55 = vor.u32 %v1703_v43, %v1643_v46 }
  0x4e   : > { %870 = vmatpush.bf16.msrb.mxu1 %v1670_v21  ;;  %1613 = vmatmul.msk.bf16.vlgmr.msra.gmra.mxu3 %vm507_vm0, %v2276_v19  ;;  %v1586_v50 = vor.u32 %v1694_v49, %v1585_v48  ;;  %v1587_v52 = vld [vmem:[%s2233_s15 + $0x18] sm:$0xf0]  ;;  %v722_v53 = vld [vmem:[%s2773_s5 + $0x30] sm:$0xff]  ;;  %v721_v56 = vld [vmem:[%s2773_s5 + $0x28] sm:$0xff]  ;;  %s2488_s15 = scalar_lea.vmem [#allocation7], %s1556_s16  ;;  %s1681_s12 = sshll.u32 %s2008_s8, 7 }
  0x4f   : > { %731 = vperm.xlu0 %1831, %v717_v27   ;;  %741 = vperm.xlu1 %1832, %v719_v35   ;;  %v1590_v57 = vor.u32 %v1692_v51, %v1587_v52  ;;  %v723_v58 = vld [vmem:[%s2773_s5 + $0x38] sm:$0xff]  ;;  %v1688_v59 = vld [vmem:[%s2770_s2 + $0x8] sm:$0xff]  ;;  %v399_v62 = vld [vmem:[%s2771_s3] sm:$0xff]  ;;  %s2809_s17 = sld [smem:[#allocation20_spill]]  ;;  %s1414_s24 = sshll.u32 %s2488_s15, 4  ;;  %s1415_s24 = int_to_ptr.vmem [resolvable:$true] %s1414_s24 }
  0x50   : > { %584 = vmatpush.bf16.msrb.mxu2 %v1602_v44  ;;  %613 = vmatpush.bf16.msrb.mxu3 %v1606_v47  ;;  %v2333_v60 = vld [vmem:[%s2770_s2 + $0x18] sm:$0xff]  ;;  %v400_v61 = vld [vmem:[%s2771_s3 + $0x8] sm:$0xff]  ;;  %v401_v63 = vld [vmem:[%s2771_s3 + $0x10] sm:$0xff]  ;;  %s1400_s7 = scalar_lea.sflag [#allocation4], %s2229_s10 }
  0x51   : > { %842 = vmatpush.bf16.msrb.mxu0 %v1658_v28  ;;  %751 = vperm.xlu2 %1833, %v721_v56   ;;  %v403_v0 = vld [vmem:[%s2771_s3 + $0x20] sm:$0xff]  ;;  %v402_v1 = vld [vmem:[%s2771_s3 + $0x18] sm:$0xff]  ;;  %v404_v2 = vld [vmem:[%s2771_s3 + $0x28] sm:$0xff] }
  0x52   : > { %871 = vmatpush.bf16.msrb.mxu1 %v1662_v29  ;;  %v1699_v3 = vld [vmem:[%s2807_s14] sm:$0xff]  ;;  %v406_v4 = vld [vmem:[%s2771_s3 + $0x38] sm:$0xff]  ;;  %v1700_v5 = vld [vmem:[%s2807_s14 + $0x8] sm:$0xff] }
  0x53   : > { %v971_v6 = vld [vmem:[%s2240_s22 + $0x1e0] sm:$0xff]  ;;  %v405_v8 = vld [vmem:[%s2771_s3 + $0x30] sm:$0xff]  ;;  %v972_v11 = vld [vmem:[%s2240_s22 + $0x1e8] sm:$0xff] }
  0x54   : > { %585 = vmatpush.bf16.msrb.mxu2 %v1586_v50  ;;  %614 = vmatpush.bf16.msrb.mxu3 %v1590_v57  ;;  %v1035_v7 = vld [vmem:[%s2240_s22 + $0x3e0] sm:$0xff]  ;;  %v1036_v12 = vld [vmem:[%s2240_s22 + $0x3e8] sm:$0xff]  ;;  %v1701_v17 = vld [vmem:[%s2807_s14 + $0x10] sm:$0xff] }
  0x55   : > { %843 = vmatpush.bf16.msrb.mxu0 %v1650_v40  ;;  %v967_v9 = vld [vmem:[%s2240_s22 + $0x1c0] sm:$0xff]  ;;  %v1032_v16 = vld [vmem:[%s2240_s22 + $0x3c8] sm:$0xff]  ;;  %v1702_v25 = vld [vmem:[%s2807_s14 + $0x18] sm:$0xff] }
  0x56   : > { %872 = vmatpush.bf16.msrb.mxu1 %v1654_v41  ;;  %v1031_v10 = vld [vmem:[%s2240_s22 + $0x3c0] sm:$0xff]  ;;  %v964_v21 = vld [vmem:[%s2240_s22 + $0x1a8] sm:$0xff] }
  0x57   : > { %756 = vperm.xlu0 %1831, %v722_v53   ;;  %761 = vperm.xlu1 %1832, %v723_v58   ;;  %v963_v13 = vld [vmem:[%s2240_s22 + $0x1a0] sm:$0xff]  ;;  %v1028_v22 = vld [vmem:[%s2240_s22 + $0x3a8] sm:$0xff] }
  0x58   : > { %1039 = vmatpush.msra.mxu2 %v971_v6  ;;  %1080 = vmatpush.msra.mxu3 %v1035_v7  ;;  %v1027_v14 = vld [vmem:[%s2240_s22 + $0x3a0] sm:$0xff]  ;;  %v1024_v26 = vld [vmem:[%s2240_s22 + $0x388] sm:$0xff] }
  0x59   : > { %844 = vmatpush.bf16.msrb.mxu0 %v1642_v54  ;;  %409 = vperm.xlu2 %1833, %v399_v62   ;;  %v959_v18 = vld [vmem:[%s2240_s22 + $0x180] sm:$0xff]  ;;  %v956_v29 = vld [vmem:[%s2240_s22 + $0x168] sm:$0xff] }
  0x5a   : > { %873 = vmatpush.bf16.msrb.mxu1 %v1646_v55  ;;  %1040 = vmatpush.msra.mxu2 %v967_v9  ;;  %v1023_v20 = vld [vmem:[%s2240_s22 + $0x380] sm:$0xff]  ;;  %v1020_v30 = vld [vmem:[%s2240_s22 + $0x368] sm:$0xff] }
  0x5b   : > { %1081 = vmatpush.msra.mxu3 %v1031_v10  ;;  %v955_v23 = vld [vmem:[%s2240_s22 + $0x160] sm:$0xff]  ;;  %v952_v33 = vld [vmem:[%s2240_s22 + $0x148] sm:$0xff] }
  0x5c   : > { %1608 = vmatmul.msk.bf16.gmra.mxu0 %vm507_vm0, %v1688_v59  ;;  %1610 = vmatmul.msk.bf16.gmra.mxu2 %vm507_vm0, %v2333_v60  ;;  %v1019_v24 = vld [vmem:[%s2240_s22 + $0x360] sm:$0xff]  ;;  %v1016_v34 = vld [vmem:[%s2240_s22 + $0x348] sm:$0xff] }
  0x5d   : > { %1612 = vmatmul.msk.bf16.gmra.mxu1 %vm507_vm0, %v1688_v59  ;;  %1121 = vmatpush.msra.mxu0 %v972_v11  ;;  %v951_v27 = vld [vmem:[%s2240_s22 + $0x140] sm:$0xff]  ;;  %v948_v37 = vld [vmem:[%s2240_s22 + $0x128] sm:$0xff] }
  0x5e   : > { %1614 = vmatmul.msk.bf16.gmra.mxu3 %vm507_vm0, %v2333_v60  ;;  %1162 = vmatpush.msra.mxu1 %v1036_v12  ;;  %v1015_v28 = vld [vmem:[%s2240_s22 + $0x340] sm:$0xff]  ;;  %v1012_v38 = vld [vmem:[%s2240_s22 + $0x328] sm:$0xff] }
  0x5f   : > { %414 = vperm.xlu0 %1831, %v400_v61   ;;  %419 = vperm.xlu1 %1832, %v401_v63   ;;  %v947_v31 = vld [vmem:[%s2240_s22 + $0x120] sm:$0xff]  ;;  %v944_v42 = vld [vmem:[%s2240_s22 + $0x108] sm:$0xff] }
  0x60   : > { %1041 = vmatpush.msra.mxu2 %v963_v13  ;;  %1082 = vmatpush.msra.mxu3 %v1027_v14  ;;  %v1011_v32 = vld [vmem:[%s2240_s22 + $0x320] sm:$0xff]  ;;  %v1008_v43 = vld [vmem:[%s2240_s22 + $0x308] sm:$0xff] }
  0x61   : > { %424 = vperm.xlu2 %1833, %v402_v1   ;;  %1163 = vmatpush.msra.mxu1 %v1032_v16  ;;  %v943_v35 = vld [vmem:[%s2240_s22 + $0x100] sm:$0xff]  ;;  %v940_v47 = vld [vmem:[%s2240_s22 + $0xe8] sm:$0xff] }
  0x62   : > { %1042 = vmatpush.msra.mxu2 %v959_v18  ;;  %1083 = vmatpush.msra.mxu3 %v1023_v20  ;;  %v1007_v36 = vld [vmem:[%s2240_s22 + $0x300] sm:$0xff]  ;;  %v1004_v49 = vld [vmem:[%s2240_s22 + $0x2e8] sm:$0xff] }
  0x63   : > { %1164 = vmatpush.msra.mxu1 %v1028_v22  ;;  %v939_v39 = vld [vmem:[%s2240_s22 + $0xe0] sm:$0xff]  ;;  %v936_v52 = vld [vmem:[%s2240_s22 + $0xc8] sm:$0xff] }
  0x64   : > { %1043 = vmatpush.msra.mxu2 %v955_v23  ;;  %1084 = vmatpush.msra.mxu3 %v1019_v24  ;;  %v1003_v40 = vld [vmem:[%s2240_s22 + $0x2e0] sm:$0xff]  ;;  %v1000_v53 = vld [vmem:[%s2240_s22 + $0x2c8] sm:$0xff] }
  0x65   : > { %1165 = vmatpush.msra.mxu1 %v1024_v26  ;;  %v935_v45 = vld [vmem:[%s2240_s22 + $0xc0] sm:$0xff]  ;;  %v932_v58 = vld [vmem:[%s2240_s22 + $0xa8] sm:$0xff]  ;;  %v973_v26 = vld [vmem:[%s2240_s22 + $0x1f0] sm:$0xff] }
  0x66   : > { %1044 = vmatpush.msra.mxu2 %v951_v27  ;;  %1085 = vmatpush.msra.mxu3 %v1015_v28  ;;  %v999_v46 = vld [vmem:[%s2240_s22 + $0x2c0] sm:$0xff]  ;;  %v928_v63 = vld [vmem:[%s2240_s22 + $0x88] sm:$0xff]  ;;  %v1037_v27 = vld [vmem:[%s2240_s22 + $0x3f0] sm:$0xff] }
  0x67   : > { %429 = vperm.xlu0 %1831, %v403_v0   ;;  %434 = vperm.xlu1 %1832, %v404_v2   ;;  %v931_v50 = vld [vmem:[%s2240_s22 + $0xa0] sm:$0xff]  ;;  %v992_v0 = vld [vmem:[%s2240_s22 + $0x288] sm:$0xff] }
  0x68   : > { %1166 = vmatpush.msra.mxu1 %v1020_v30  ;;  %1045 = vmatpush.msra.mxu2 %v947_v31  ;;  %v995_v51 = vld [vmem:[%s2240_s22 + $0x2a0] sm:$0xff]  ;;  %v924_v2 = vld [vmem:[%s2240_s22 + $0x68] sm:$0xff] }
  0x69   : > { %439 = vperm.xlu2 %1833, %v405_v8   ;;  %1086 = vmatpush.msra.mxu3 %v1011_v32  ;;  %v927_v56 = vld [vmem:[%s2240_s22 + $0x80] sm:$0xff]  ;;  %v920_v13 = vld [vmem:[%s2240_s22 + $0x48] sm:$0xff] }
  0x6a   : > { %1167 = vmatpush.msra.mxu1 %v1016_v34  ;;  %1046 = vmatpush.msra.mxu2 %v943_v35  ;;  %v991_v57 = vld [vmem:[%s2240_s22 + $0x280] sm:$0xff]  ;;  %v984_v14 = vld [vmem:[%s2240_s22 + $0x248] sm:$0xff] }
  0x6b   : > { %1087 = vmatpush.msra.mxu3 %v1007_v36  ;;  %v923_v61 = vld [vmem:[%s2240_s22 + $0x60] sm:$0xff]  ;;  %v916_v16 = vld [vmem:[%s2240_s22 + $0x28] sm:$0xff] }
  0x6c   : > { %1615 = vmatmul.msk.bf16.vlgmr.msrb.gmra.mxu2 %vm507_vm0, %v2268_v15  ;;  %1671 = vmatmul.msk.bf16.vlgmr.msrb.gmra.mxu0 %vm824_vm1, %v1699_v3  ;;  %v987_v62 = vld [vmem:[%s2240_s22 + $0x260] sm:$0xff]  ;;  %v912_v23 = vld [vmem:[%s2240_s22 + $0x8] sm:$0xff] }
  0x6d   : > { %1675 = vmatmul.msk.bf16.vlgmr.msrb.gmra.mxu1 %vm824_vm1, %v1699_v3  ;;  %1047 = vmatpush.msra.mxu2 %v939_v39  ;;  %v988_v3 = vld [vmem:[%s2240_s22 + $0x268] sm:$0xff]  ;;  %v919_v6 = vld [vmem:[%s2240_s22 + $0x40] sm:$0xff]  ;;  %v969_v39 = vld [vmem:[%s2240_s22 + $0x1d0] sm:$0xff] }
  0x6e   : > { %1619 = vmatmul.msk.bf16.vlgmr.msrb.gmra.mxu3 %vm507_vm0, %v2268_v15  ;;  %v968_v15 = vld [vmem:[%s2240_s22 + $0x1c8] sm:$0xff]  ;;  %1168 = vmatpush.msra.mxu1 %v1012_v38  ;;  %v983_v7 = vld [vmem:[%s2240_s22 + $0x240] sm:$0xff] }
  0x6f   : > { %444 = vperm.xlu0 %1831, %v406_v4   ;;  %1122 = vmatpush.msra.mxu0 %v968_v15  ;;  %v915_v8 = vld [vmem:[%s2240_s22 + $0x20] sm:$0xff]  ;;  %v976_v24 = vld [vmem:[%s2240_s22 + $0x208] sm:$0xff] }
  0x70   : > { %1088 = vmatpush.msra.mxu3 %v1003_v40  ;;  %1169 = vmatpush.msra.mxu1 %v1008_v43  ;;  %v979_v12 = vld [vmem:[%s2240_s22 + $0x220] sm:$0xff]  ;;  %v1033_v40 = vld [vmem:[%s2240_s22 + $0x3d0] sm:$0xff] }
  0x71   : > { %1123 = vmatpush.msra.mxu0 %v964_v21  ;;  %1048 = vmatpush.msra.mxu2 %v935_v45  ;;  %v911_v21 = vld [vmem:[%s2240_s22] sm:$0xff] }
  0x72   : > { %1089 = vmatpush.msra.mxu3 %v999_v46  ;;  %1170 = vmatpush.msra.mxu1 %v1004_v49  ;;  %v975_v22 = vld [vmem:[%s2240_s22 + $0x200] sm:$0xff]  ;;  %v1038_v46 = vld [vmem:[%s2240_s22 + $0x3f8] sm:$0xff]  ;;  %v1029_v49 = vld [vmem:[%s2240_s22 + $0x3b0] sm:$0xff] }
  0x73   : > { %1049 = vmatpush.msra.mxu2 %v931_v50 }
  0x74   : > { %1090 = vmatpush.msra.mxu3 %v995_v51  ;;  %1171 = vmatpush.msra.mxu1 %v1000_v53 }
  0x75   : > { %1050 = vmatpush.msra.mxu2 %v927_v56 }
  0x76   : > { %1091 = vmatpush.msra.mxu3 %v991_v57 }
  0x77   : > { %1051 = vmatpush.msra.mxu2 %v923_v61 }
  0x78   : > { %1092 = vmatpush.msra.mxu3 %v987_v62 }
  0x79   : > { %1052 = vmatpush.msra.mxu2 %v919_v6 }
  0x7a   : > { %1093 = vmatpush.msra.mxu3 %v983_v7 }
  0x7b   : > { %1053 = vmatpush.msra.mxu2 %v915_v8 }
  0x7c   : > { %1616 = vmatmul.msk.bf16.gmra.mxu2 %vm507_vm0, %v1688_v59  ;;  %1672 = vmatmul.msk.bf16.gmra.mxu0 %vm824_vm1, %v1700_v5 }
  0x7d   : > { %1676 = vmatmul.msk.bf16.gmra.mxu1 %vm824_vm1, %v1700_v5  ;;  %1094 = vmatpush.msra.mxu3 %v979_v12  ;;  %v1034_v12 = vld [vmem:[%s2240_s22 + $0x3d8] sm:$0xff] }
  0x7e   : > { %1620 = vmatmul.msk.bf16.gmra.mxu3 %vm507_vm0, %v1688_v59  ;;  %1054 = vmatpush.msra.mxu2 %v911_v21  ;;  %v957_v21 = vld [vmem:[%s2240_s22 + $0x170] sm:$0xff] }
  0x7f   : > { %1095 = vmatpush.msra.mxu3 %v975_v22  ;;  %v1021_v22 = vld [vmem:[%s2240_s22 + $0x370] sm:$0xff] }
  0x80   : > { %1203 = vmatpush.msrb.mxu2 %v973_v26 }
  0x81   : > { %1244 = vmatpush.msrb.mxu3 %v1037_v27 }
  0x82   : > { %1204 = vmatpush.msrb.mxu2 %v969_v39  ;;  %v1022_v39 = vld [vmem:[%s2240_s22 + $0x378] sm:$0xff] }
  0x83   : > { %1245 = vmatpush.msrb.mxu3 %v1033_v40 }
  0x85   : > { %1246 = vmatpush.msrb.mxu3 %v1029_v49 }
  0x8c   : > { %1617 = vmatmul.msk.bf16.gmra.mxu2 %vm507_vm0, %v2276_v19  ;;  %1673 = vmatmul.msk.bf16.gmra.mxu0 %vm824_vm1, %v1701_v17 }
  0x8d   : > { %1677 = vmatmul.msk.bf16.gmra.mxu1 %vm824_vm1, %v1701_v17  ;;  %v980_v17 = vld [vmem:[%s2240_s22 + $0x228] sm:$0xff] }
  0x8e   : > { %1621 = vmatmul.msk.bf16.gmra.mxu3 %vm507_vm0, %v2276_v19  ;;  %v960_v19 = vld [vmem:[%s2240_s22 + $0x188] sm:$0xff] }
  0x8f   : > { %1124 = vmatpush.msra.mxu0 %v960_v19 }
  0x91   : > { %1125 = vmatpush.msra.mxu0 %v956_v29 }
  0x93   : > { %1126 = vmatpush.msra.mxu0 %v952_v33 }
  0x95   : > { %1127 = vmatpush.msra.mxu0 %v948_v37 }
  0x97   : > { %1128 = vmatpush.msra.mxu0 %v944_v42  ;;  %v974_v42 = vld [vmem:[%s2240_s22 + $0x1f8] sm:$0xff] }
  0x99   : > { %1129 = vmatpush.msra.mxu0 %v940_v47  ;;  %v965_v47 = vld [vmem:[%s2240_s22 + $0x1b0] sm:$0xff] }
  0x9a   : > { %1205 = vmatpush.msrb.mxu2 %v965_v47 }
  0x9b   : > { %1130 = vmatpush.msra.mxu0 %v936_v52 }
  0x9c   : > { %1618 = vmatmul.msk.bf16.gmra.mxu2 %vm507_vm0, %v2333_v60  ;;  %1674 = vmatmul.msk.bf16.gmra.mxu0 %vm824_vm1, %v1702_v25 }
  0x9d   : > { %1678 = vmatmul.msk.bf16.gmra.mxu1 %vm824_vm1, %v1702_v25  ;;  %1131 = vmatpush.msra.mxu0 %v932_v58 }
  0x9e   : > { %1622 = vmatmul.msk.bf16.gmra.mxu3 %vm507_vm0, %v2333_v60  ;;  %v996_v60 = vld [vmem:[%s2240_s22 + $0x2a8] sm:$0xff] }
  0x9f   : > { %1172 = vmatpush.msra.mxu1 %v996_v60  ;;  %1132 = vmatpush.msra.mxu0 %v928_v63 }
  0xa1   : > { %v2431_v41 = vpop.permute.xlu2 %746  ;;  %1173 = vmatpush.msra.mxu1 %v992_v0  ;;  %1133 = vmatpush.msra.mxu0 %v924_v2 }
  0xa3   : > { %1174 = vmatpush.msra.mxu1 %v988_v3  ;;  %1134 = vmatpush.msra.mxu0 %v920_v13  ;;  %v961_v13 = vld [vmem:[%s2240_s22 + $0x190] sm:$0xff] }
  0xa4   : > { %1206 = vmatpush.msrb.mxu2 %v961_v13  ;;  %v1014_v13 = vld [vmem:[%s2240_s22 + $0x338] sm:$0xff] }
  0xa5   : > { %1175 = vmatpush.msra.mxu1 %v984_v14  ;;  %1135 = vmatpush.msra.mxu0 %v916_v16  ;;  %v1025_v16 = vld [vmem:[%s2240_s22 + $0x390] sm:$0xff] }
  0xa6   : > { %1247 = vmatpush.msrb.mxu3 %v1025_v16  ;;  %1207 = vmatpush.msrb.mxu2 %v957_v21  ;;  %v941_v16 = vld [vmem:[%s2240_s22 + $0xf0] sm:$0xff] }
  0xa7   : > { %1176 = vmatpush.msra.mxu1 %v980_v17  ;;  %1136 = vmatpush.msra.mxu0 %v912_v23  ;;  %v966_v17 = vld [vmem:[%s2240_s22 + $0x1b8] sm:$0xff] }
  0xa8   : > { %1248 = vmatpush.msrb.mxu3 %v1021_v22 }
  0xa9   : > { %1177 = vmatpush.msra.mxu1 %v976_v24  ;;  %1285 = vmatpush.msrb.mxu0 %v974_v42 }
  0xab   : > { %v2447_v54 = vpop.permute.xlu2 %751  ;;  %1326 = vmatpush.msrb.mxu1 %v1038_v46  ;;  %v1013_v46 = vld [vmem:[%s2240_s22 + $0x330] sm:$0xff] }
  0xad   : > { %1327 = vmatpush.msrb.mxu1 %v1034_v12  ;;  %v950_v12 = vld [vmem:[%s2240_s22 + $0x138] sm:$0xff] }
  0xb3   : > { %v2461_v1 = vpop.permute.xlu2 %409 }
  0xb6   : > { %v2435_v44 = vpop.permute.xlu0 %726 }
  0xb9   : > { %v2440_v48 = vpop.permute.xlu1 %736 }
  0xc1   : > { %v2449_v55 = vpop.permute.xlu0 %731  ;;  %v2454_v59 = vpop.permute.xlu1 %741 }
  0xc9   : > { %v2465_v4 = vpop.permute.xlu0 %756  ;;  %v529_v5 = vpop.f32.mrf.mxu0 }
  0xca   : > { %v530_v9 = vadd.f32 %v529_v5, %v2461_v1  ;;  %v558_v10 = vpop.f32.mrf.mxu1  ;;  %v2471_v11 = vpop.permute.xlu1 %761 }
  0xcb   : > { %v559_v15 = vadd.f32 %v558_v10, %v2461_v1  ;;  %v970_v10 = vld [vmem:[%s2240_s22 + $0x1d8] sm:$0xff] }
  0xcc   : > { %v636_v18 = vmax.f32 %v530_v9, 0.0  ;;  %v2513_v9 = vpop.permute.xlu2 %424  ;;  %1286 = vmatpush.msrb.mxu0 %v970_v10  ;;  %v1009_v10 = vld [vmem:[%s2240_s22 + $0x310] sm:$0xff] }
  0xcd   : > { %v637_v20 = vmax.f32 %v559_v15, 0.0 }
  0xce   : > { %1287 = vmatpush.msrb.mxu0 %v966_v17  ;;  %v1005_v17 = vld [vmem:[%s2240_s22 + $0x2f0] sm:$0xff] }
  0xcf   : > { %v668_v25 = vpack.c.bf16 %v637_v20, %v636_v18  ;;  %v539_v19 = vpop.f32.mrf.mxu2  ;;  %v1030_v18 = vld [vmem:[%s2240_s22 + $0x3b8] sm:$0xff] }
  0xd0   : > { %1328 = vmatpush.msrb.mxu1 %v1030_v18 }
  0xd1   : > { %v568_v28 = vpop.f32.mrf.mxu3  ;;  %v2486_v29 = vpop.permute.xlu0 %414  ;;  %684 = vst [vmem:[%s2488_s15] sm:$0xff] %v668_v25 }
  0xd2   : > { %v531_v30 = vpop.f32.mrf.mxu0  ;;  %v560_v32 = vpop.f32.mrf.mxu1 }
  0xd3   : > { %v532_v31 = vadd.f32 %v531_v30, %v2486_v29  ;;  %v2492_v33 = vpop.permute.xlu1 %419  ;;  %v561_v34 = vadd.f32 %v560_v32, %v2486_v29  ;;  %v1026_v32 = vld [vmem:[%s2240_s22 + $0x398] sm:$0xff] }
  0xd4   : > { %1329 = vmatpush.msrb.mxu1 %v1026_v32  ;;  %v1001_v32 = vld [vmem:[%s2240_s22 + $0x2d0] sm:$0xff] }
  0xd5   : > { %v640_v35 = vmax.f32 %v532_v31, 0.0  ;;  %v641_v36 = vmax.f32 %v561_v34, 0.0  ;;  %v962_v31 = vld [vmem:[%s2240_s22 + $0x198] sm:$0xff]  ;;  %v953_v34 = vld [vmem:[%s2240_s22 + $0x150] sm:$0xff] }
  0xd6   : > { %1288 = vmatpush.msrb.mxu0 %v962_v31  ;;  %1208 = vmatpush.msrb.mxu2 %v953_v34  ;;  %v942_v34 = vld [vmem:[%s2240_s22 + $0xf8] sm:$0xff] }
  0xd7   : > { %v670_v37 = vpack.c.bf16 %v641_v36, %v640_v35  ;;  %v541_v38 = vpop.f32.mrf.mxu2  ;;  %1330 = vmatpush.msrb.mxu1 %v1022_v39  ;;  %v997_v39 = vld [vmem:[%s2240_s22 + $0x2b0] sm:$0xff] }
  0xd9   : > { %v570_v43 = vpop.f32.mrf.mxu3  ;;  %v2498_v45 = vpop.permute.xlu0 %429  ;;  %686 = vst [vmem:[%s2488_s15 + $0x10] sm:$0xff] %v670_v37  ;;  %v1017_v37 = vld [vmem:[%s2240_s22 + $0x350] sm:$0xff] }
  0xda   : > { %v534_v50 = vpop.f32.mrf.mxu0  ;;  %v540_v51 = vadd.f32 %v539_v19, %v2498_v45  ;;  %v569_v52 = vadd.f32 %v568_v28, %v2498_v45  ;;  %v563_v56 = vpop.f32.mrf.mxu1  ;;  %1249 = vmatpush.msrb.mxu3 %v1017_v37 }
  0xdb   : > { %v535_v53 = vadd.f32 %v534_v50, %v2492_v33  ;;  %v2507_v57 = vpop.permute.xlu1 %434  ;;  %v564_v58 = vadd.f32 %v563_v56, %v2492_v33 }
  0xdc   : > { %v652_v60 = vmax.f32 %v540_v51, 0.0  ;;  %v653_v61 = vmax.f32 %v569_v52, 0.0  ;;  %v542_v62 = vadd.f32 %v541_v38, %v2507_v57  ;;  %v571_v0 = vadd.f32 %v570_v43, %v2507_v57  ;;  %v958_v38 = vld [vmem:[%s2240_s22 + $0x178] sm:$0xff]  ;;  %v949_v43 = vld [vmem:[%s2240_s22 + $0x130] sm:$0xff]  ;;  %v2541_v51 = vpop.permute.xlu2 %439  ;;  %1250 = vmatpush.msrb.mxu3 %v1013_v46 }
  0xdd   : > { %v644_v63 = vmax.f32 %v535_v53, 0.0  ;;  %v645_v2 = vmax.f32 %v564_v58, 0.0  ;;  %1289 = vmatpush.msrb.mxu0 %v958_v38  ;;  %1209 = vmatpush.msrb.mxu2 %v949_v43  ;;  %v933_v38 = vld [vmem:[%s2240_s22 + $0xb0] sm:$0xff] }
  0xde   : > { %v676_v3 = vpack.c.bf16 %v653_v61, %v652_v60  ;;  %v656_v5 = vmax.f32 %v542_v62, 0.0  ;;  %v657_v6 = vmax.f32 %v571_v0, 0.0  ;;  %1251 = vmatpush.msrb.mxu3 %v1009_v10 }
  0xdf   : > { %v672_v7 = vpack.c.bf16 %v645_v2, %v644_v63  ;;  %v544_v8 = vpop.f32.mrf.mxu2  ;;  %v954_v2 = vld [vmem:[%s2240_s22 + $0x158] sm:$0xff] }
  0xe0   : > { %692 = vst [vmem:[%s2488_s15 + $0x40] sm:$0xff] %v676_v3  ;;  %v678_v15 = vpack.c.bf16 %v657_v6, %v656_v5  ;;  %v545_v56 = vadd.f32 %v544_v8, %v2541_v51  ;;  %v1018_v3 = vld [vmem:[%s2240_s22 + $0x358] sm:$0xff]  ;;  %v945_v6 = vld [vmem:[%s2240_s22 + $0x110] sm:$0xff]  ;;  %1290 = vmatpush.msrb.mxu0 %v954_v2  ;;  %1252 = vmatpush.msrb.mxu3 %v1005_v17 }
  0xe1   : > { %v573_v14 = vpop.f32.mrf.mxu3  ;;  %688 = vst [vmem:[%s2488_s15 + $0x20] sm:$0xff] %v672_v7  ;;  %v2527_v27 = vpop.permute.xlu0 %444  ;;  %1331 = vmatpush.msrb.mxu1 %v1018_v3  ;;  %1210 = vmatpush.msrb.mxu2 %v945_v6  ;;  %v989_v6 = vld [vmem:[%s2240_s22 + $0x270] sm:$0xff]  ;;  %v994_v17 = vld [vmem:[%s2240_s22 + $0x298] sm:$0xff] }
  0xe2   : > { %v536_v20 = vpop.f32.mrf.mxu0  ;;  %v565_v24 = vpop.f32.mrf.mxu1  ;;  %694 = vst [vmem:[%s2488_s15 + $0x50] sm:$0xff] %v678_v15  ;;  %v574_v58 = vadd.f32 %v573_v14, %v2541_v51  ;;  %v660_v63 = vmax.f32 %v545_v56, 0.0  ;;  %1291 = vmatpush.msrb.mxu0 %v950_v12  ;;  %1253 = vmatpush.msrb.mxu3 %v1001_v32  ;;  %v929_v56 = vld [vmem:[%s2240_s22 + $0x90] sm:$0xff] }
  0xe3   : > { %v537_v23 = vadd.f32 %v536_v20, %v2513_v9  ;;  %v566_v25 = vadd.f32 %v565_v24, %v2513_v9  ;;  %1332 = vmatpush.msrb.mxu1 %v1014_v13  ;;  %1211 = vmatpush.msrb.mxu2 %v941_v16  ;;  %v930_v16 = vld [vmem:[%s2240_s22 + $0x98] sm:$0xff] }
  0xe4   : > { %v661_v0 = vmax.f32 %v574_v58, 0.0  ;;  %1254 = vmatpush.msrb.mxu3 %v997_v39 }
  0xe5   : > { %v648_v19 = vmax.f32 %v537_v23, 0.0  ;;  %v649_v26 = vmax.f32 %v566_v25, 0.0 }
  0xe6   : > { %v680_v5 = vpack.c.bf16 %v661_v0, %v660_v63  ;;  %v993_v63 = vld [vmem:[%s2240_s22 + $0x290] sm:$0xff]  ;;  %v934_v0 = vld [vmem:[%s2240_s22 + $0xb8] sm:$0xff] }
  0xe7   : > { %v674_v28 = vpack.c.bf16 %v649_v26, %v648_v19  ;;  %v546_v30 = vpop.f32.mrf.mxu2  ;;  %v946_v19 = vld [vmem:[%s2240_s22 + $0x118] sm:$0xff]  ;;  %1255 = vmatpush.msrb.mxu3 %v993_v63 }
  0xe8   : > { %v547_v36 = vadd.f32 %v546_v30, %v2527_v27  ;;  %696 = vst [vmem:[%s2488_s15 + $0x60] sm:$0xff] %v680_v5  ;;  %v1010_v26 = vld [vmem:[%s2240_s22 + $0x318] sm:$0xff]  ;;  %1292 = vmatpush.msrb.mxu0 %v946_v19  ;;  %v925_v5 = vld [vmem:[%s2240_s22 + $0x70] sm:$0xff] }
  0xe9   : > { %v575_v35 = vpop.f32.mrf.mxu3  ;;  %690 = vst [vmem:[%s2488_s15 + $0x30] sm:$0xff] %v674_v28  ;;  %v937_v28 = vld [vmem:[%s2240_s22 + $0xd0] sm:$0xff]  ;;  %1333 = vmatpush.msrb.mxu1 %v1010_v26  ;;  %1256 = vmatpush.msrb.mxu3 %v989_v6 }
  0xea   : > { %v576_v40 = vadd.f32 %v575_v35, %v2527_v27  ;;  %v846_v42 = vpop.f32.mrf.mxu0  ;;  %v664_v47 = vmax.f32 %v547_v36, 0.0  ;;  %v875_v50 = vpop.f32.mrf.mxu1  ;;  %v1006_v35 = vld [vmem:[%s2240_s22 + $0x2f8] sm:$0xff]  ;;  %1212 = vmatpush.msrb.mxu2 %v937_v28  ;;  %1293 = vmatpush.msrb.mxu0 %v942_v34  ;;  %v981_v19 = vld [vmem:[%s2240_s22 + $0x230] sm:$0xff] }
  0xeb   : > { %v847_v49 = vadd.f32 %v846_v42, %v2435_v44  ;;  %v876_v53 = vadd.f32 %v875_v50, %v2435_v44  ;;  %1334 = vmatpush.msrb.mxu1 %v1006_v35 }
  0xec   : > { %v665_v52 = vmax.f32 %v576_v40, 0.0  ;;  %1213 = vmatpush.msrb.mxu2 %v933_v38 }
  0xed   : > { %v2546_v60 = vmax.f32 %v847_v49, 0.0  ;;  %v2548_v62 = vmax.f32 %v876_v53, 0.0  ;;  %v1002_v53 = vld [vmem:[%s2240_s22 + $0x2d8] sm:$0xff] }
  0xee   : > { %v682_v61 = vpack.c.bf16 %v665_v52, %v664_v47  ;;  %v938_v52 = vld [vmem:[%s2240_s22 + $0xd8] sm:$0xff]  ;;  %1335 = vmatpush.msrb.mxu1 %v1002_v53  ;;  %1214 = vmatpush.msrb.mxu2 %v929_v56 }
  0xef   : > { %1055 = vmatmul.f32.vlgmr.msra.gmra.mxu2 %v2546_v60  ;;  %1137 = vmatmul.f32.vlgmr.msra.gmra.mxu0 %v2546_v60  ;;  %v587_v44 = vpop.f32.mrf.mxu2 }
  0xf0   : > { %698 = vst [vmem:[%s2488_s15 + $0x70] sm:$0xff] %v682_v61  ;;  %1096 = vmatmul.f32.vlgmr.msra.gmra.mxu3 %v2548_v62  ;;  %1178 = vmatmul.f32.vlgmr.msra.gmra.mxu1 %v2548_v62  ;;  %v588_v7 = vadd.f32 %v587_v44, %v2461_v1  ;;  %v998_v44 = vld [vmem:[%s2240_s22 + $0x2b8] sm:$0xff] }
  0xf1   : > { %v616_v8 = vpop.f32.mrf.mxu3  ;;  %1294 = vmatpush.msrb.mxu0 %v938_v52  ;;  %1336 = vmatpush.msrb.mxu1 %v998_v44  ;;  %v978_v52 = vld [vmem:[%s2240_s22 + $0x218] sm:$0xff] }
  0xf2   : > { %v617_v14 = vadd.f32 %v616_v8, %v2461_v1  ;;  %v848_v15 = vpop.f32.mrf.mxu0  ;;  %v638_v18 = vmax.f32 %v588_v7, 0.0  ;;  %v877_v21 = vpop.f32.mrf.mxu1  ;;  %1215 = vmatpush.msrb.mxu2 %v925_v5 }
  0xf3   : > { %v849_v20 = vadd.f32 %v848_v15, %v2449_v55  ;;  %v878_v23 = vadd.f32 %v877_v21, %v2449_v55  ;;  %1295 = vmatpush.msrb.mxu0 %v934_v0  ;;  %v926_v21 = vld [vmem:[%s2240_s22 + $0x78] sm:$0xff]  ;;  %1337 = vmatpush.msrb.mxu1 %v994_v17 }
  0xf4   : > { %v639_v22 = vmax.f32 %v617_v14, 0.0 }
  0xf5   : > { %v2568_v1 = vmax.f32 %v849_v20, 0.0  ;;  %v2570_v25 = vmax.f32 %v878_v23, 0.0  ;;  %v985_v20 = vld [vmem:[%s2240_s22 + $0x250] sm:$0xff]  ;;  %1296 = vmatpush.msrb.mxu0 %v930_v16 }
  0xf6   : > { %v669_v24 = vpack.c.bf16 %v639_v22, %v638_v18  ;;  %v921_v18 = vld [vmem:[%s2240_s22 + $0x50] sm:$0xff]  ;;  %1257 = vmatpush.msrb.mxu3 %v985_v20 }
  0xf7   : > { %1058 = vmatmul.f32.gmra.mxu2 %v2568_v1  ;;  %1140 = vmatmul.f32.gmra.mxu0 %v2568_v1  ;;  %v589_v55 = vpop.f32.mrf.mxu2 }
  0xf8   : > { %685 = vst [vmem:[%s2488_s15 + $0x8] sm:$0xff] %v669_v24  ;;  %1099 = vmatmul.f32.gmra.mxu3 %v2570_v25  ;;  %1181 = vmatmul.f32.gmra.mxu1 %v2570_v25  ;;  %v590_v30 = vadd.f32 %v589_v55, %v2486_v29  ;;  %v990_v24 = vld [vmem:[%s2240_s22 + $0x278] sm:$0xff]  ;;  %v917_v55 = vld [vmem:[%s2240_s22 + $0x30] sm:$0xff] }
  0xf9   : > { %v618_v31 = vpop.f32.mrf.mxu3  ;;  %1216 = vmatpush.msrb.mxu2 %v921_v18  ;;  %1297 = vmatpush.msrb.mxu0 %v926_v21 }
  0xfa   : > { %v619_v36 = vadd.f32 %v618_v31, %v2486_v29  ;;  %v851_v37 = vpop.f32.mrf.mxu0  ;;  %v642_v40 = vmax.f32 %v590_v30, 0.0  ;;  %v880_v43 = vpop.f32.mrf.mxu1  ;;  %v922_v30 = vld [vmem:[%s2240_s22 + $0x58] sm:$0xff]  ;;  %1338 = vmatpush.msrb.mxu1 %v990_v24  ;;  %1258 = vmatpush.msrb.mxu3 %v981_v19 }
  0xfb   : > { %v852_v42 = vadd.f32 %v851_v37, %v2440_v48  ;;  %v881_v47 = vadd.f32 %v880_v43, %v2440_v48  ;;  %v986_v31 = vld [vmem:[%s2240_s22 + $0x258] sm:$0xff]  ;;  %1217 = vmatpush.msrb.mxu2 %v917_v55  ;;  %1298 = vmatpush.msrb.mxu0 %v922_v30 }
  0xfc   : > { %v643_v46 = vmax.f32 %v619_v36, 0.0  ;;  %1339 = vmatpush.msrb.mxu1 %v986_v31  ;;  %v918_v43 = vld [vmem:[%s2240_s22 + $0x38] sm:$0xff] }
  0xfd   : > { %v2589_v29 = vmax.f32 %v852_v42, 0.0  ;;  %v2591_v50 = vmax.f32 %v881_v47, 0.0  ;;  %v977_v42 = vld [vmem:[%s2240_s22 + $0x210] sm:$0xff]  ;;  %1299 = vmatpush.msrb.mxu0 %v918_v43 }
  0xfe   : > { %v671_v49 = vpack.c.bf16 %v643_v46, %v642_v40  ;;  %v913_v40 = vld [vmem:[%s2240_s22 + $0x10] sm:$0xff]  ;;  %v982_v46 = vld [vmem:[%s2240_s22 + $0x238] sm:$0xff]  ;;  %1259 = vmatpush.msrb.mxu3 %v977_v42 }
  0xff   : > { %1061 = vmatmul.f32.gmra.mxu2 %v2589_v29  ;;  %1143 = vmatmul.f32.gmra.mxu0 %v2589_v29  ;;  %v592_v48 = vpop.f32.mrf.mxu2 }
 0x100   : > { %687 = vst [vmem:[%s2488_s15 + $0x18] sm:$0xff] %v671_v49  ;;  %1102 = vmatmul.f32.gmra.mxu3 %v2591_v50  ;;  %1184 = vmatmul.f32.gmra.mxu1 %v2591_v50  ;;  %v593_v58 = vadd.f32 %v592_v48, %v2492_v33  ;;  %v914_v48 = vld [vmem:[%s2240_s22 + $0x18] sm:$0xff]  ;;  %s2808_s22 = sld [smem:[#allocation12_spill]] }
 0x101   : > { %v621_v61 = vpop.f32.mrf.mxu3  ;;  %1218 = vmatpush.msrb.mxu2 %v913_v40  ;;  %1340 = vmatpush.msrb.mxu1 %v982_v46 }
 0x102   : > { %v622_v2 = vadd.f32 %v621_v61, %v2492_v33  ;;  %v853_v3 = vpop.f32.mrf.mxu0  ;;  %v646_v7 = vmax.f32 %v593_v58, 0.0  ;;  %v882_v10 = vpop.f32.mrf.mxu1  ;;  %1300 = vmatpush.msrb.mxu0 %v914_v48 }
 0x103   : > { %v854_v8 = vadd.f32 %v853_v3, %v2454_v59  ;;  %v883_v13 = vadd.f32 %v882_v10, %v2454_v59  ;;  %1341 = vmatpush.msrb.mxu1 %v978_v52 }
 0x104   : > { %v647_v12 = vmax.f32 %v622_v2, 0.0 }
 0x105   : > { %v2610_v33 = vmax.f32 %v854_v8, 0.0  ;;  %v2612_v15 = vmax.f32 %v883_v13, 0.0 }
 0x106   : > { %v673_v14 = vpack.c.bf16 %v647_v12, %v646_v7  ;;  %s1680_s0 = sshll.u32 %s2808_s22, 2 }
 0x107   : > { %1064 = vmatmul.f32.gmra.mxu2 %v2610_v33  ;;  %1146 = vmatmul.f32.gmra.mxu0 %v2610_v33  ;;  %v594_v59 = vpop.f32.mrf.mxu2  ;;  %s1411_s20 = sadd.s32 %s1681_s12, %s1680_s0  ;;  %s1914_s12 = scalar_lea.hbm %s2809_s17, 1024 }
 0x108   : > { %689 = vst [vmem:[%s2488_s15 + $0x28] sm:$0xff] %v673_v14  ;;  %1105 = vmatmul.f32.gmra.mxu3 %v2612_v15  ;;  %1187 = vmatmul.f32.gmra.mxu1 %v2612_v15  ;;  %v595_v22 = vadd.f32 %v594_v59, %v2513_v9  ;;  %s1682_s30 = sshll.u32 %s1411_s20, 2 }
 0x109   : > { %v623_v23 = vpop.f32.mrf.mxu3  ;;  %s1413_s18 = scalar_lea.hbm %s2809_s17, %s1682_s30 }
 0x10a   : > { %v624_v26 = vadd.f32 %v623_v23, %v2513_v9  ;;  %v856_v28 = vpop.f32.mrf.mxu0  ;;  %v650_v32 = vmax.f32 %v595_v22, 0.0  ;;  %v885_v35 = vpop.f32.mrf.mxu1  ;;  %s1416_s19 = sshll.u32 %s1413_s18, 4  ;;  %s1417_s19 = int_to_ptr.hbm [resolvable:$true] %s1416_s19 }
 0x10b   : > { %v857_v34 = vadd.f32 %v856_v28, %v2431_v41  ;;  %v886_v37 = vadd.f32 %v885_v35, %v2431_v41  ;;  %s1908_s21 = sshra.s32 %s1417_s19, 4  ;;  %s1909_s21 = int_to_ptr.hbm [resolvable:$true] %s1908_s21 }
 0x10c   : > { %v651_v36 = vmax.f32 %v624_v26, 0.0  ;;  %s1910_s16 = scalar_lea.hbm %s1909_s21, 256  ;;  %p1915_p4 = scmp.lt.s32.totalorder %s1909_s21, %s2809_s17 }
 0x10d   : > { %v2633_v9 = vmax.f32 %v857_v34, 0.0  ;;  %v2635_v39 = vmax.f32 %v886_v37, 0.0  ;;  %p1911_p6 = scmp.ne.s32.totalorder %s1909_s21, %s1910_s16  ;;  %p1916_p5 = scmp.lt.s32.totalorder %s1914_s12, %s1910_s16 }
 0x10e   : > { %v675_v38 = vpack.c.bf16 %v651_v36, %v650_v32 }
 0x10f   : > { %1067 = vmatmul.f32.gmra.mxu2 %v2633_v9  ;;  %1149 = vmatmul.f32.gmra.mxu0 %v2633_v9  ;;  %v597_v41 = vpop.f32.mrf.mxu2  ;;  %p1912_p8 = pnand %p1911_p6, %p2171_p11  ;;  %p1917_p9 = por %p1916_p5, %p1915_p4 }
 0x110   : > { %691 = vst [vmem:[%s2488_s15 + $0x38] sm:$0xff] %v675_v38  ;;  %1108 = vmatmul.f32.gmra.mxu3 %v2635_v39  ;;  %1190 = vmatmul.f32.gmra.mxu1 %v2635_v39  ;;  %v598_v47 = vadd.f32 %v597_v41, %v2498_v45 }
 0x111   : > { %v626_v49 = vpop.f32.mrf.mxu3  ;;  %p1913_p0 = pneg %p1912_p8 }
 0x112   : > { %v627_v53 = vadd.f32 %v626_v49, %v2498_v45  ;;  %v858_v56 = vpop.f32.mrf.mxu0  ;;  %v654_v58 = vmax.f32 %v598_v47, 0.0  ;;  %v887_v63 = vpop.f32.mrf.mxu1 }
 0x113   : > { %v859_v61 = vadd.f32 %v858_v56, %v2447_v54  ;;  %v888_v44 = vadd.f32 %v887_v63, %v2447_v54  ;;  %p1918_p3 = pnand %p1917_p9, %p1913_p0 }
 0x114   : > { %v655_v0 = vmax.f32 %v627_v53, 0.0 }
 0x115   : > { %v2652_v2 = vmax.f32 %v859_v61, 0.0  ;;  %v2654_v5 = vmax.f32 %v888_v44, 0.0 }
 0x116   : > { %v677_v3 = vpack.c.bf16 %v655_v0, %v654_v58 }
 0x117   : > { %1070 = vmatmul.f32.gmra.mxu2 %v2652_v2  ;;  %1152 = vmatmul.f32.gmra.mxu0 %v2652_v2  ;;  %v599_v45 = vpop.f32.mrf.mxu2 }
 0x118   : > { %693 = vst [vmem:[%s2488_s15 + $0x48] sm:$0xff] %v677_v3  ;;  %1111 = vmatmul.f32.gmra.mxu3 %v2654_v5  ;;  %1193 = vmatmul.f32.gmra.mxu1 %v2654_v5  ;;  %v600_v54 = vadd.f32 %v599_v45, %v2507_v57 }
 0x119   : > { %v628_v6 = vpop.f32.mrf.mxu3 }
 0x11a   : > { %v629_v7 = vadd.f32 %v628_v6, %v2507_v57  ;;  %v861_v8 = vpop.f32.mrf.mxu0  ;;  %v658_v10 = vmax.f32 %v600_v54, 0.0  ;;  %v890_v13 = vpop.f32.mrf.mxu1 }
 0x11b   : > { %v862_v12 = vadd.f32 %v861_v8, %v2465_v4  ;;  %v891_v16 = vadd.f32 %v890_v13, %v2465_v4 }
 0x11c   : > { %v659_v14 = vmax.f32 %v629_v7, 0.0 }
 0x11d   : > { %v907_v17 = vmax.f32 %v862_v12, 0.0  ;;  %v908_v18 = vmax.f32 %v891_v16, 0.0 }
 0x11e   : > { %v679_v59 = vpack.c.bf16 %v659_v14, %v658_v10 }
 0x11f   : > { %1073 = vmatmul.f32.gmra.mxu2 %v907_v17  ;;  %1155 = vmatmul.f32.gmra.mxu0 %v907_v17  ;;  %v602_v20 = vpop.f32.mrf.mxu2 }
 0x120   : > { %695 = vst [vmem:[%s2488_s15 + $0x58] sm:$0xff] %v679_v59  ;;  %1114 = vmatmul.f32.gmra.mxu3 %v908_v18  ;;  %1196 = vmatmul.f32.gmra.mxu1 %v908_v18  ;;  %v603_v57 = vadd.f32 %v602_v20, %v2541_v51 }
 0x121   : > { %v631_v21 = vpop.f32.mrf.mxu3 }
 0x122   : > { %v632_v22 = vadd.f32 %v631_v21, %v2541_v51  ;;  %v863_v23 = vpop.f32.mrf.mxu0  ;;  %v662_v24 = vmax.f32 %v603_v57, 0.0  ;;  %v892_v4 = vpop.f32.mrf.mxu1 }
 0x123   : > { %v864_v55 = vadd.f32 %v863_v23, %v2471_v11  ;;  %v893_v26 = vadd.f32 %v892_v4, %v2471_v11 }
 0x124   : > { %v663_v19 = vmax.f32 %v632_v22, 0.0 }
 0x125   : > { %v909_v28 = vmax.f32 %v864_v55, 0.0  ;;  %v910_v31 = vmax.f32 %v893_v26, 0.0 }
 0x126   : > { %v681_v30 = vpack.c.bf16 %v663_v19, %v662_v24 }
 0x127   : > { %1076 = vmatmul.f32.gmra.mxu2 %v909_v28  ;;  %1158 = vmatmul.f32.gmra.mxu0 %v909_v28  ;;  %v604_v32 = vpop.f32.mrf.mxu2 }
 0x128   : > { %697 = vst [vmem:[%s2488_s15 + $0x68] sm:$0xff] %v681_v30  ;;  %1117 = vmatmul.f32.gmra.mxu3 %v910_v31  ;;  %1199 = vmatmul.f32.gmra.mxu1 %v910_v31  ;;  %v605_v51 = vadd.f32 %v604_v32, %v2527_v27 }
 0x129   : > { %v633_v34 = vpop.f32.mrf.mxu3 }
 0x12a   : > { %v634_v35 = vadd.f32 %v633_v34, %v2527_v27  ;;  %v666_v36 = vmax.f32 %v605_v51, 0.0 }
 0x12c   : > { %v667_v37 = vmax.f32 %v634_v35, 0.0 }
 0x12e   : > { %v683_v38 = vpack.c.bf16 %v667_v37, %v666_v36 }
 0x12f   : > { %1219 = vmatmul.f32.vlgmr.msrb.gmra.mxu2 %v2546_v60  ;;  %1301 = vmatmul.f32.vlgmr.msrb.gmra.mxu0 %v2546_v60 }
 0x130   : > { %699 = vst [vmem:[%s2488_s15 + $0x78] sm:$0xff] %v683_v38  ;;  %1260 = vmatmul.f32.vlgmr.msrb.gmra.mxu3 %v2548_v62  ;;  %1342 = vmatmul.f32.vlgmr.msrb.gmra.mxu1 %v2548_v62 }
 0x137   : > { %1222 = vmatmul.f32.gmra.mxu2 %v2568_v1  ;;  %1304 = vmatmul.f32.gmra.mxu0 %v2568_v1 }
 0x138   : > { %1263 = vmatmul.f32.gmra.mxu3 %v2570_v25  ;;  %1345 = vmatmul.f32.gmra.mxu1 %v2570_v25 }
 0x13f   : > { %1225 = vmatmul.f32.gmra.mxu2 %v2589_v29  ;;  %1307 = vmatmul.f32.gmra.mxu0 %v2589_v29 }
 0x140   : > { %1266 = vmatmul.f32.gmra.mxu3 %v2591_v50  ;;  %1348 = vmatmul.f32.gmra.mxu1 %v2591_v50 }
 0x147   : > { %1228 = vmatmul.f32.gmra.mxu2 %v2610_v33  ;;  %1310 = vmatmul.f32.gmra.mxu0 %v2610_v33 }
 0x148   : > { %1269 = vmatmul.f32.gmra.mxu3 %v2612_v15  ;;  %1351 = vmatmul.f32.gmra.mxu1 %v2612_v15 }
 0x14f   : > { %1231 = vmatmul.f32.gmra.mxu2 %v2633_v9  ;;  %1313 = vmatmul.f32.gmra.mxu0 %v2633_v9 }
 0x150   : > { %1272 = vmatmul.f32.gmra.mxu3 %v2635_v39  ;;  %1354 = vmatmul.f32.gmra.mxu1 %v2635_v39 }
 0x157   : > { %1234 = vmatmul.f32.gmra.mxu2 %v2652_v2  ;;  %1316 = vmatmul.f32.gmra.mxu0 %v2652_v2 }
 0x158   : > { %1275 = vmatmul.f32.gmra.mxu3 %v2654_v5  ;;  %1357 = vmatmul.f32.gmra.mxu1 %v2654_v5 }
 0x15f   : > { %1237 = vmatmul.f32.gmra.mxu2 %v907_v17  ;;  %1319 = vmatmul.f32.gmra.mxu0 %v907_v17 }
 0x160   : > { %1278 = vmatmul.f32.gmra.mxu3 %v908_v18  ;;  %1360 = vmatmul.f32.gmra.mxu1 %v908_v18 }
 0x167   : > { %1240 = vmatmul.f32.gmra.mxu2 %v909_v28  ;;  %1322 = vmatmul.f32.gmra.mxu0 %v909_v28 }
 0x168   : > { %1281 = vmatmul.f32.gmra.mxu3 %v910_v31  ;;  %1363 = vmatmul.f32.gmra.mxu1 %v910_v31 }
 0x16c   : > { %v1138_v11 = vpop.f32.mrf.mxu0 }
 0x16d   : > { %v1179_v27 = vpop.f32.mrf.mxu1 }
 0x16e   : > { %v1180_v1 = vadd.f32 %v1179_v27, %v1138_v11 }
 0x172   : > { %v1056_v60 = vpop.f32.mrf.mxu2 }
 0x173   : > { %v1097_v62 = vpop.f32.mrf.mxu3 }
 0x174   : > { %v1098_v25 = vadd.f32 %v1097_v62, %v1056_v60  ;;  %v1141_v29 = vpop.f32.mrf.mxu0 }
 0x175   : > { %v1182_v50 = vpop.f32.mrf.mxu1 }
 0x176   : > { %v1367_v33 = vpack.c.bf16 %v1180_v1, %v1098_v25  ;;  %v1183_v39 = vadd.f32 %v1182_v50, %v1141_v29 }
 0x178   : > { %1383 = vst [vmem:[%s2488_s15 + $0x80] sm:$0xff] %v1367_v33 }
 0x17a   : > { %v1059_v15 = vpop.f32.mrf.mxu2 }
 0x17b   : > { %v1100_v9 = vpop.f32.mrf.mxu3 }
 0x17c   : > { %v1101_v40 = vadd.f32 %v1100_v9, %v1059_v15  ;;  %v1144_v42 = vpop.f32.mrf.mxu0 }
 0x17d   : > { %v1185_v43 = vpop.f32.mrf.mxu1 }
 0x17e   : > { %v1369_v46 = vpack.c.bf16 %v1183_v39, %v1101_v40  ;;  %v1186_v49 = vadd.f32 %v1185_v43, %v1144_v42 }
 0x180   : > { %1385 = vst [vmem:[%s2488_s15 + $0x90] sm:$0xff] %v1369_v46 }
 0x182   : > { %v1062_v41 = vpop.f32.mrf.mxu2 }
 0x183   : > { %v1103_v47 = vpop.f32.mrf.mxu3 }
 0x184   : > { %v1104_v48 = vadd.f32 %v1103_v47, %v1062_v41  ;;  %v1147_v52 = vpop.f32.mrf.mxu0 }
 0x185   : > { %v1188_v53 = vpop.f32.mrf.mxu1 }
 0x186   : > { %v1371_v56 = vpack.c.bf16 %v1186_v49, %v1104_v48  ;;  %v1189_v63 = vadd.f32 %v1188_v53, %v1147_v52 }
 0x188   : > { %1387 = vst [vmem:[%s2488_s15 + $0xa0] sm:$0xff] %v1371_v56 }
 0x18a   : > { %v1065_v58 = vpop.f32.mrf.mxu2 }
 0x18b   : > { %v1106_v61 = vpop.f32.mrf.mxu3 }
 0x18c   : > { %v1107_v0 = vadd.f32 %v1106_v61, %v1065_v58  ;;  %v1150_v44 = vpop.f32.mrf.mxu0 }
 0x18d   : > { %v1191_v2 = vpop.f32.mrf.mxu1 }
 0x18e   : > { %v1373_v3 = vpack.c.bf16 %v1189_v63, %v1107_v0  ;;  %v1192_v54 = vadd.f32 %v1191_v2, %v1150_v44 }
 0x190   : > { %1389 = vst [vmem:[%s2488_s15 + $0xb0] sm:$0xff] %v1373_v3 }
 0x192   : > { %v1068_v5 = vpop.f32.mrf.mxu2 }
 0x193   : > { %v1109_v45 = vpop.f32.mrf.mxu3 }
 0x194   : > { %v1110_v6 = vadd.f32 %v1109_v45, %v1068_v5  ;;  %v1153_v7 = vpop.f32.mrf.mxu0 }
 0x195   : > { %v1194_v8 = vpop.f32.mrf.mxu1 }
 0x196   : > { %v1375_v10 = vpack.c.bf16 %v1192_v54, %v1110_v6  ;;  %v1195_v14 = vadd.f32 %v1194_v8, %v1153_v7 }
 0x198   : > { %1391 = vst [vmem:[%s2488_s15 + $0xc0] sm:$0xff] %v1375_v10 }
 0x19a   : > { %v1071_v12 = vpop.f32.mrf.mxu2 }
 0x19b   : > { %v1112_v13 = vpop.f32.mrf.mxu3 }
 0x19c   : > { %v1113_v16 = vadd.f32 %v1112_v13, %v1071_v12  ;;  %v1156_v17 = vpop.f32.mrf.mxu0 }
 0x19d   : > { %v1197_v59 = vpop.f32.mrf.mxu1 }
 0x19e   : > { %v1377_v18 = vpack.c.bf16 %v1195_v14, %v1113_v16  ;;  %v1198_v21 = vadd.f32 %v1197_v59, %v1156_v17 }
 0x1a0   : > { %1393 = vst [vmem:[%s2488_s15 + $0xd0] sm:$0xff] %v1377_v18 }
 0x1a2   : > { %v1074_v20 = vpop.f32.mrf.mxu2 }
 0x1a3   : > { %v1115_v57 = vpop.f32.mrf.mxu3 }
 0x1a4   : > { %v1116_v22 = vadd.f32 %v1115_v57, %v1074_v20  ;;  %v1159_v23 = vpop.f32.mrf.mxu0 }
 0x1a5   : > { %v1200_v24 = vpop.f32.mrf.mxu1 }
 0x1a6   : > { %v1379_v55 = vpack.c.bf16 %v1198_v21, %v1116_v22  ;;  %v1201_v26 = vadd.f32 %v1200_v24, %v1159_v23 }
 0x1a8   : > { %1395 = vst [vmem:[%s2488_s15 + $0xe0] sm:$0xff] %v1379_v55 }
 0x1aa   : > { %v1077_v4 = vpop.f32.mrf.mxu2 }
 0x1ab   : > { %v1118_v19 = vpop.f32.mrf.mxu3 }
 0x1ac   : > { %v1119_v28 = vadd.f32 %v1118_v19, %v1077_v4  ;;  %v1302_v30 = vpop.f32.mrf.mxu0 }
 0x1ad   : > { %v1343_v31 = vpop.f32.mrf.mxu1 }
 0x1ae   : > { %v1381_v32 = vpack.c.bf16 %v1201_v26, %v1119_v28  ;;  %v1344_v35 = vadd.f32 %v1343_v31, %v1302_v30 }
 0x1b0   : > { %1397 = vst [vmem:[%s2488_s15 + $0xf0] sm:$0xff] %v1381_v32 }
 0x1b2   : > { %v1220_v51 = vpop.f32.mrf.mxu2 }
 0x1b3   : > { %v1261_v34 = vpop.f32.mrf.mxu3 }
 0x1b4   : > { %v1262_v36 = vadd.f32 %v1261_v34, %v1220_v51  ;;  %v1305_v37 = vpop.f32.mrf.mxu0 }
 0x1b5   : > { %v1346_v38 = vpop.f32.mrf.mxu1 }
 0x1b6   : > { %v1368_v11 = vpack.c.bf16 %v1344_v35, %v1262_v36  ;;  %v1347_v62 = vadd.f32 %v1346_v38, %v1305_v37 }
 0x1b8   : > { %1384 = vst [vmem:[%s2488_s15 + $0x88] sm:$0xff] %v1368_v11 }
 0x1ba   : > { %v1223_v27 = vpop.f32.mrf.mxu2 }
 0x1bb   : > { %v1264_v60 = vpop.f32.mrf.mxu3 }
 0x1bc   : > { %v1265_v1 = vadd.f32 %v1264_v60, %v1223_v27  ;;  %v1308_v25 = vpop.f32.mrf.mxu0 }
 0x1bd   : > { %v1349_v29 = vpop.f32.mrf.mxu1 }
 0x1be   : > { %v1370_v50 = vpack.c.bf16 %v1347_v62, %v1265_v1  ;;  %v1350_v9 = vadd.f32 %v1349_v29, %v1308_v25 }
 0x1c0   : > { %1386 = vst [vmem:[%s2488_s15 + $0x98] sm:$0xff] %v1370_v50 }
 0x1c2   : > { %v1226_v33 = vpop.f32.mrf.mxu2 }
 0x1c3   : > { %v1267_v15 = vpop.f32.mrf.mxu3 }
 0x1c4   : > { %v1268_v39 = vadd.f32 %v1267_v15, %v1226_v33  ;;  %v1311_v40 = vpop.f32.mrf.mxu0 }
 0x1c5   : > { %v1352_v42 = vpop.f32.mrf.mxu1 }
 0x1c6   : > { %v1372_v43 = vpack.c.bf16 %v1350_v9, %v1268_v39  ;;  %v1353_v47 = vadd.f32 %v1352_v42, %v1311_v40 }
 0x1c8   : > { %1388 = vst [vmem:[%s2488_s15 + $0xa8] sm:$0xff] %v1372_v43 }
 0x1ca   : > { %v1229_v46 = vpop.f32.mrf.mxu2 }
 0x1cb   : > { %v1270_v41 = vpop.f32.mrf.mxu3 }
 0x1cc   : > { %v1271_v49 = vadd.f32 %v1270_v41, %v1229_v46  ;;  %v1314_v48 = vpop.f32.mrf.mxu0 }
 0x1cd   : > { %v1355_v52 = vpop.f32.mrf.mxu1 }
 0x1ce   : > { %v1374_v53 = vpack.c.bf16 %v1353_v47, %v1271_v49  ;;  %v1356_v61 = vadd.f32 %v1355_v52, %v1314_v48 }
 0x1d0   : > { %1390 = vst [vmem:[%s2488_s15 + $0xb8] sm:$0xff] %v1374_v53 }
 0x1d2   : > { %v1232_v56 = vpop.f32.mrf.mxu2 }
 0x1d3   : > { %v1273_v58 = vpop.f32.mrf.mxu3 }
 0x1d4   : > { %v1274_v63 = vadd.f32 %v1273_v58, %v1232_v56  ;;  %v1317_v0 = vpop.f32.mrf.mxu0 }
 0x1d5   : > { %v1358_v44 = vpop.f32.mrf.mxu1 }
 0x1d6   : > { %v1376_v2 = vpack.c.bf16 %v1356_v61, %v1274_v63  ;;  %v1359_v45 = vadd.f32 %v1358_v44, %v1317_v0 }
 0x1d8   : > { %1392 = vst [vmem:[%s2488_s15 + $0xc8] sm:$0xff] %v1376_v2 }
 0x1da   : > { %v1235_v3 = vpop.f32.mrf.mxu2 }
 0x1db   : > { %v1276_v5 = vpop.f32.mrf.mxu3 }
 0x1dc   : > { %v1277_v54 = vadd.f32 %v1276_v5, %v1235_v3  ;;  %v1320_v7 = vpop.f32.mrf.mxu0 }
 0x1dd   : > { %v1361_v8 = vpop.f32.mrf.mxu1 }
 0x1de   : > { %v1378_v6 = vpack.c.bf16 %v1359_v45, %v1277_v54  ;;  %v1362_v13 = vadd.f32 %v1361_v8, %v1320_v7 }
 0x1e0   : > { %1394 = vst [vmem:[%s2488_s15 + $0xd8] sm:$0xff] %v1378_v6 }
 0x1e2   : > { %v1238_v10 = vpop.f32.mrf.mxu2 }
 0x1e3   : > { %v1279_v12 = vpop.f32.mrf.mxu3 }
 0x1e4   : > { %v1280_v14 = vadd.f32 %v1279_v12, %v1238_v10  ;;  %v1323_v17 = vpop.f32.mrf.mxu0 }
 0x1e5   : > { %v1364_v59 = vpop.f32.mrf.mxu1 }
 0x1e6   : > { %v1380_v16 = vpack.c.bf16 %v1362_v13, %v1280_v14  ;;  %v1365_v57 = vadd.f32 %v1364_v59, %v1323_v17 }
 0x1e8   : > { %1396 = vst [vmem:[%s2488_s15 + $0xe8] sm:$0xff] %v1380_v16 }
 0x1ea   : > { %v1241_v18 = vpop.f32.mrf.mxu2 }
 0x1eb   : > { %v1282_v20 = vpop.f32.mrf.mxu3 }
 0x1ec   : > { %v1283_v21 = vadd.f32 %v1282_v20, %v1241_v18 }
 0x1ee   : > { %v1382_v22 = vpack.c.bf16 %v1365_v57, %v1283_v21 }
 0x1f0   : > { %1398 = vst [vmem:[%s2488_s15 + $0xf8] sm:$0xff] %v1382_v22 }
 0x1f1   : > { %1921 = shalt.err (!%p1918_p3)
}
 0x1f2   : > { %s2028_s10 = smov 256   ;;  %s2029_s15 = smov 512  }
 0x1f3   : > { %s2030_s4 = smov 16  }
 0x1f4   : > { %1719 = dma.vmem_to_hbm [thread:$0]  (%p2171_p11), %s1415_s24, 4096, %s1417_s19, %s1400_s7, %s2028_s10, %s2029_s15, %s2030_s4  }
 0x1f5 PF: > { %s2811_s13 = sld [smem:[#allocation11_spill]]  ;;  %p1733_p10 = scmp.ge.s32.totalorder %s2020_s11, 2 }
 0x1f7   : > { %p1729_p12 = pnand %p1733_p10, %p2175_p13 }
 0x1f9   : > { %p1730_p7 = pneg %p1729_p12 }
 0x1fb   : > { %s1431_s22 = sand.u32 1, %s2811_s13  }
 0x1fc   : > { %s1432_s21 = scalar_lea.sflag [#allocation4], %s1431_s22 }
 0x1fd   : > { %1975 = dma.done.wait (%p1730_p7), %s1432_s21, 4096  }
 0x1fe   : > { %1977 = vsyncadd (%p1730_p7), %s1432_s21, 4294963200  ;;  %s26_s11 = sadd.s32 1, %s2020_s11   ;;  %s2813_s8 = smov %s2181_s27 }
 0x1ff   : > { %p23_p1 = scmp.ge.s32.totalorder %s26_s11, 6   ;;  %s2814_s19 = sld [smem:[#allocation13_spill]] }
 0x200   : > { %s2815_s7 = sld [smem:[#allocation14_spill]]  ;;  %s2817_s24 = smov %s1984_s25 }
 0x201   : > { %s2816_s10 = sld [smem:[#allocation15_spill]]  ;;  %s2818_s25 = smov %s1988_s26 }
 0x202   : > { %s2819_s26 = smov %s2204_s23  ;;  %s2820_s27 = smov %s1996_s28 }
 0x203   : > { %s2821_s28 = smov %s2000_s29  ;;  %s2822_s29 = smov %s2813_s8 }
 0x204   : > { %s2823_s30 = smov %s2012_s9  ;;  %25 = sbr.rel (!%p23_p1) target bundleno = 15 (0xf), region = 109 }
 0x205   : > { %s2824_s8 = smov %s2814_s19 }
 0x206   : > { %s2825_s9 = smov %s2815_s7 }
 0x209   :  { %1438 = vsyncpa [#allocation3], 1 }
 0x20a   :  { %1440 = vsyncpa [#allocation3 + $0x1], 1 }
 0x20b   :  { %1441 = vsyncpa [#allocation6], 1 }
 0x20c   :  { %1443 = vsyncpa [#allocation6 + $0x1], 1 }
 0x20d   :  { %1444 = vsyncpa [#allocation4], 1 }
 0x20e   :  { %1446 = vsyncpa [#allocation4 + $0x1], 1 }

</bundles_post_ra>
